<compile_context>
chip_gen: v7x
topology: tpu7x:2x2x1
jax: 0.10.0
libtpu: 0.0.40
codegen_flags: <defaults>
</compile_context>

<pallas_src>
import jax
import jax.numpy as jnp
from jax.experimental import pallas as pl
from jax.experimental.pallas import tpu as pltpu

IN_CHANNELS = 1       # UNetSCN default in_channels
M = 16                # UNetSCN default m (out_channels of sparse model)
NUM_CLASSES = 5       # from the module
BN_EPS = 1e-4         # scn.BatchNormReLU default eps
FULL_SCALE = 4096     # scn.InputLayer spatial bound
LANE = 128            # TPU lane width; all in-kernel feature planes padded to it
N_TAPS = 27           # 3x3x3 submanifold kernel taps
TAPS_PAD = 32         # taps padded to 32 so packed K is a multiple of 128
CIN1_PAD = 4          # in_channels 1 -> 4 so conv1's packed K = 32*4 = 128 (lane dense)

_OFFSETS = jnp.array(
    [[dz, dy, dx] for dz in (-1, 0, 1) for dy in (-1, 0, 1) for dx in (-1, 0, 1)],
    dtype=jnp.int32)                                      # [27, 3]


def _round_up(a, b):
    return (a + b - 1) // b * b


# ---------------------------------------------------------------------------
# Rulebook glue: sorted packed-key neighbor lookup (no [N, 27, N] tensor).
# ---------------------------------------------------------------------------

def _pack_key(b, z, y, x):
    # 31-bit packed coordinate key: batch < 16, coords < 512 (exact for the demo).
    # TODO(synk): 64-bit / hierarchical keys to cover the full full_scale=4096 range.
    return ((b * 512 + z) * 512 + y) * 512 + x


def _build_rulebook(coords, n_pad):
    """Neighbor index table idx [n_pad, 27] int32.

    Missing neighbors and padding rows point at the all-zero row `n`, so they
    contribute exactly nothing to the gathered neighborhoods (no mask needed).
    """
    n = coords.shape[0]
    z, y, x, b = coords[:, 0], coords[:, 1], coords[:, 2], coords[:, 3]
    key = _pack_key(b, z, y, x)                                   # [N]
    order = jnp.argsort(key)
    skey = key[order]

    tgt = coords[:, None, :3] + _OFFSETS[None, :, :]              # [N,27,3]
    tb = jnp.broadcast_to(b[:, None], (n, N_TAPS))
    in_range = jnp.all((tgt >= 0) & (tgt < 512), axis=-1)
    qkey = _pack_key(tb, tgt[..., 0], tgt[..., 1], tgt[..., 2])
    qkey = jnp.where(in_range, qkey, -1)

    pos = jnp.clip(jnp.searchsorted(skey, qkey), 0, n - 1)
    found = skey[pos] == qkey
    idx = jnp.where(found, order[pos], n).astype(jnp.int32)

    pad = n_pad - n
    return jnp.concatenate([idx, jnp.full((pad, N_TAPS), n, jnp.int32)], axis=0)


def _gather_neighborhoods(table, idx):
    """Packed im2col slab.

    table [n_pad, cin_pad] bf16 (rows >= n are exactly zero), idx [n_pad, 27]
    -> [n_pad, TAPS_PAD*cin_pad] bf16 where column k*cin_pad + c is channel c of tap k.
    """
    n_pad, cin = table.shape
    g = jnp.take(table, idx, axis=0)                              # [n_pad, 27, cin]
    pad = jnp.zeros((n_pad, TAPS_PAD - N_TAPS, cin), table.dtype)
    return jnp.concatenate([g, pad], axis=1).reshape(n_pad, TAPS_PAD * cin)


# ---------------------------------------------------------------------------
# Pallas kernels
# ---------------------------------------------------------------------------

def _conv_kernel(g_ref, w_ref, o_ref, stats_ref):
    """One row tile of a packed-K 3x3x3 submanifold convolution.

    g_ref     : VMEM [T, K]   bf16  packed neighborhoods (K = 32 * cin_pad)
    w_ref     : VMEM [K, 128] bf16  packed tap weights (zero beyond real cin/cout)
    o_ref     : VMEM [T, 128] bf16  lane-dense conv output tile
    stats_ref : VMEM [1, 2, 128] f32 per-tile (sum, sum of squares) for the next BN
    """
    acc = jnp.dot(g_ref[...], w_ref[...], preferred_element_type=jnp.float32)
    o_ref[...] = acc.astype(o_ref.dtype)
    ssum = jnp.sum(acc, axis=0, keepdims=True)                    # [1, 128]
    ssq = jnp.sum(acc * acc, axis=0, keepdims=True)               # [1, 128]
    stats_ref[...] = jnp.concatenate([ssum, ssq], axis=0)[None, :, :]


def _sparse_conv(slab, w_packed, *, block_rows):
    n_pad, kdim = slab.shape
    num_tiles = n_pad // block_rows
    return pl.pallas_call(
        _conv_kernel,
        out_shape=(jax.ShapeDtypeStruct((n_pad, LANE), jnp.bfloat16),
                   jax.ShapeDtypeStruct((num_tiles, 2, LANE), jnp.float32)),
        grid=(num_tiles,),
        in_specs=[
            pl.BlockSpec((block_rows, kdim), lambda i: (i, 0)),   # packed neighborhoods
            pl.BlockSpec((kdim, LANE), lambda i: (0, 0)),         # invariant weights
        ],
        out_specs=(
            pl.BlockSpec((block_rows, LANE), lambda i: (i, 0)),   # lane-dense bf16 out
            pl.BlockSpec((1, 2, LANE), lambda i: (i, 0, 0)),      # BN partials (f32)
        ),
        compiler_params=pltpu.CompilerParams(
            dimension_semantics=("parallel",),       # independent row tiles -> both TCs
            # Working set at T=512, K=512: 2x512 KiB slab + 2x128 KiB weights
            # + 2x128 KiB out + stats ~= 1.5 MiB; 32 MiB leaves ample headroom and
            # fits every generation (v7x 64 MiB/TC, v5e/v6e 128 MiB).
            vmem_limit_bytes=32 * 1024 * 1024),
    )(slab, w_packed)


def _head_kernel(x_ref, scale_ref, shift_ref, w_ref, b_ref, o_ref):
    # Fused BatchNormReLU(m) + OutputLayer + Linear(m, num_classes).
    y = jnp.maximum(x_ref[...].astype(jnp.float32) * scale_ref[...] + shift_ref[...],
                    0.0)
    o_ref[...] = jnp.dot(y.astype(jnp.bfloat16), w_ref[...],
                         preferred_element_type=jnp.float32) + b_ref[...]


def _head(x_full, scale, shift, w, b, *, block_rows):
    n_pad = x_full.shape[0]
    num_tiles = n_pad // block_rows
    return pl.pallas_call(
        _head_kernel,
        out_shape=jax.ShapeDtypeStruct((n_pad, LANE), jnp.float32),
        grid=(num_tiles,),
        in_specs=[
            pl.BlockSpec((block_rows, LANE), lambda i: (i, 0)),   # bf16 activations
            pl.BlockSpec((1, LANE), lambda i: (0, 0)),            # BN scale
            pl.BlockSpec((1, LANE), lambda i: (0, 0)),            # BN shift
            pl.BlockSpec((LANE, LANE), lambda i: (0, 0)),         # linear weight
            pl.BlockSpec((1, LANE), lambda i: (0, 0)),            # linear bias
        ],
        out_specs=pl.BlockSpec((block_rows, LANE), lambda i: (i, 0)),
        compiler_params=pltpu.CompilerParams(
            dimension_semantics=("parallel",),
            vmem_limit_bytes=32 * 1024 * 1024),                   # ~0.9 MiB used at T=512
    )(x_full, scale, shift, w, b)


# ---------------------------------------------------------------------------
# Tiny glue: fold BN batch statistics into a per-channel affine; apply it once
# per row (NOT once per gathered copy) and keep padding rows exactly zero.
# ---------------------------------------------------------------------------

def _bn_scale_shift(stats, gamma, beta, n_valid):
    # Training-mode (batch) statistics, as in the previous implementation.
    # Eval-mode BN would source mean/var from running stats here instead.
    s = jnp.sum(stats, axis=0)                                    # [2, 128]
    mean = s[0] / n_valid
    var = jnp.maximum(s[1] / n_valid - mean * mean, 0.0)
    inv = jax.lax.rsqrt(var + BN_EPS)
    gamma_p = jnp.zeros((LANE,), jnp.float32).at[:gamma.shape[0]].set(gamma)
    beta_p = jnp.zeros((LANE,), jnp.float32).at[:beta.shape[0]].set(beta)
    scale = gamma_p * inv
    shift = beta_p - mean * scale
    return scale.reshape(1, LANE), shift.reshape(1, LANE)


def _apply_bnrelu_rows(x, scale, shift, n, cin):
    """x [n_pad, 128] bf16 conv output -> [n_pad, cin] bf16 feature table.

    BN-ReLU is applied exactly once per row; rows >= n (including the zero row
    gathered for missing taps) are forced back to exactly zero so the next conv's
    missing-tap contributions and batch statistics stay exact without any mask.
    """
    y = x[:, :cin].astype(jnp.float32) * scale[0, :cin] + shift[0, :cin]
    y = jnp.maximum(y, 0.0)
    row_valid = (jnp.arange(x.shape[0]) < n)[:, None]
    return jnp.where(row_valid, y, 0.0).astype(jnp.bfloat16)


# ---------------------------------------------------------------------------
# Parameters (deterministic init, shapes as implied by UNetSCN.__init__)
# ---------------------------------------------------------------------------

def init_params(key):
    k0, k1, k2, k3 = jax.random.split(key, 4)
    p = {}
    p["w_sub0"] = (jax.random.normal(k0, (N_TAPS, IN_CHANNELS, M), jnp.float32)
                   / jnp.sqrt(27.0 * IN_CHANNELS))
    p["bn_u_gamma"] = jnp.ones((M,), jnp.float32)
    p["bn_u_beta"] = jnp.zeros((M,), jnp.float32)
    p["w_sub1"] = (jax.random.normal(k1, (N_TAPS, M, M), jnp.float32)
                   / jnp.sqrt(27.0 * M))
    p["bn_out_gamma"] = jnp.ones((M,), jnp.float32)
    p["bn_out_beta"] = jnp.zeros((M,), jnp.float32)
    # nn.Linear(m, num_classes): weight [num_classes, m], bias [num_classes]
    p["w_lin"] = (jax.random.normal(k2, (NUM_CLASSES, M), jnp.float32)
                  / jnp.sqrt(float(M)))
    p["b_lin"] = (jax.random.normal(k3, (NUM_CLASSES,), jnp.float32)
                  / jnp.sqrt(float(M)))
    return p


def _pack_conv_weight(w, cin_pad):
    """w [27, cin, cout] f32 -> [TAPS_PAD*cin_pad, 128] bf16, row k*cin_pad+c = w[k,c,:]."""
    taps, cin, cout = w.shape
    wp = jnp.zeros((TAPS_PAD, cin_pad, LANE), jnp.float32)
    wp = wp.at[:taps, :cin, :cout].set(w)
    return wp.reshape(TAPS_PAD * cin_pad, LANE).astype(jnp.bfloat16)


# ---------------------------------------------------------------------------
# Forward pass (mirrors UNetSCN.forward)
# ---------------------------------------------------------------------------

def unet_scn_forward(params, coords, feats):
    n = coords.shape[0]
    # Row tile (<=512 rows); n_pad reserves >= 1 all-zero row (index n) used as the
    # "missing neighbor" gather target.
    block_rows = min(512, _round_up(n + 1, 64))
    n_pad = _round_up(n + 1, block_rows)

    # scn.InputLayer(3, full_scale, mode=4): demo inputs are unique voxels -> identity.
    idx = _build_rulebook(coords, n_pad)                          # [n_pad, 27]

    w1 = _pack_conv_weight(params["w_sub0"], CIN1_PAD)            # [128, 128]
    w2 = _pack_conv_weight(params["w_sub1"], M)                   # [512, 128]

    # scn.SubmanifoldConvolution(3, in_channels, m, 3, False)
    feats_t = jnp.zeros((n_pad, CIN1_PAD), jnp.bfloat16).at[:n, :IN_CHANNELS].set(
        feats.astype(jnp.bfloat16))
    slab1 = _gather_neighborhoods(feats_t, idx)                   # [n_pad, 128] bf16
    x1, s1 = _sparse_conv(slab1, w1, block_rows=block_rows)

    # scn.UNet level-0 block (block_reps=1, residual_blocks=False):
    #   BatchNormReLU(m) -> SubmanifoldConvolution(m, m, 3, False).
    # TODO(synk): deeper scn.UNet levels (strided sparse Convolution/Deconvolution with
    # changing active-site rulebooks and skip concatenation) are omitted, as before.
    scale1, shift1 = _bn_scale_shift(s1, params["bn_u_gamma"], params["bn_u_beta"], n)
    t1 = _apply_bnrelu_rows(x1, scale1, shift1, n, M)             # [n_pad, 16] bf16
    slab2 = _gather_neighborhoods(t1, idx)                        # [n_pad, 512] bf16
    x2, s2 = _sparse_conv(slab2, w2, block_rows=block_rows)

    # scn.BatchNormReLU(m) ; scn.OutputLayer(3) ; self.linear(x) fused into one kernel.
    scale2, shift2 = _bn_scale_shift(s2, params["bn_out_gamma"], params["bn_out_beta"], n)
    w_lin = jnp.zeros((LANE, LANE), jnp.bfloat16).at[:M, :NUM_CLASSES].set(
        params["w_lin"].T.astype(jnp.bfloat16))
    b_lin = jnp.zeros((1, LANE), jnp.float32).at[0, :NUM_CLASSES].set(params["b_lin"])
    out = _head(x2, scale2, shift2, w_lin, b_lin, block_rows=block_rows)
    return out[:n, :NUM_CLASSES]


# ---------------------------------------------------------------------------
# Main
# ---------------------------------------------------------------------------

if __name__ == "__main__":
    key = jax.random.PRNGKey(0)
    k_sel, k_feat, k_par = jax.random.split(key, 3)

    # 2 batches x 32 unique voxels each, drawn from a dense 4x4x4 grid so every
    # point has occupied 3x3x3 neighbors (coords well within full_scale=4096).
    base = jnp.stack(
        jnp.meshgrid(jnp.arange(4), jnp.arange(4), jnp.arange(4), indexing="ij"),
        axis=-1).reshape(-1, 3).astype(jnp.int32)         # [64, 3]
    per_batch = 32
    pts = []
    for bidx in range(2):
        sel = jax.random.permutation(jax.random.fold_in(k_sel, bidx), 64)[:per_batch]
        xyz = base[sel]
        pts.append(jnp.concatenate(
            [xyz, jnp.full((per_batch, 1), bidx, jnp.int32)], axis=1))
    coords = jnp.concatenate(pts, axis=0)                 # [64, 4]
    feats = jax.random.normal(k_feat, (coords.shape[0], IN_CHANNELS), jnp.float32)

    params = init_params(k_par)

    out = jax.jit(unet_scn_forward)(params, coords, feats)
    out = jax.block_until_ready(out)
    assert out.shape == (coords.shape[0], NUM_CLASSES)
    assert out.dtype == jnp.float32
    assert bool(jnp.all(jnp.isfinite(out)))
    print("KERNEL_OK")
</pallas_src>

<mosaic_0001>
module attributes {stable_mosaic.version = 11 : i64} {
  func.func @_conv_kernel(%arg0: i32, %arg1: memref<128x128xbf16, #tpu.memory_space<vmem>>, %arg2: memref<128x128xbf16, #tpu.memory_space<vmem>>, %arg3: memref<128x128xbf16, #tpu.memory_space<vmem>>, %arg4: memref<1x2x128xf32, #tpu.memory_space<vmem>>) attributes {dimension_semantics = [#tpu.dimension_semantics<parallel>], iteration_bounds = array<i64: 1>, scalar_prefetch = 0 : i64, scratch_operands = 0 : i64, tpu.core_type = #tpu.core_type<tc>, window_params = [{transform_indices = @transform_0, window_bounds = array<i64: 128, 128>}, {pipeline_mode = #tpu.pipeline_mode<synchronous>, transform_indices = @transform_1, window_bounds = array<i64: 128, 128>}, {transform_indices = @transform_2, window_bounds = array<i64: 128, 128>}, {transform_indices = @transform_3, window_bounds = array<i64: 1, 2, 128>}]} {
    %c0 = arith.constant 0 : index
    %c0_0 = arith.constant 0 : index
    %0 = vector.load %arg1[%c0, %c0_0] : memref<128x128xbf16, #tpu.memory_space<vmem>>, vector<128x128xbf16>
    %c0_1 = arith.constant 0 : index
    %c0_2 = arith.constant 0 : index
    %1 = vector.load %arg2[%c0_1, %c0_2] : memref<128x128xbf16, #tpu.memory_space<vmem>>, vector<128x128xbf16>
    %cst = arith.constant dense<0.000000e+00> : vector<128x128xf32>
    %2 = tpu.matmul %0, %1, %cst {dimension_numbers = #tpu.dot_dimension_numbers<[1], [0], [0], [1], [0, 0, 1, 1], [], []>} : vector<128x128xbf16>, vector<128x128xbf16>, vector<128x128xf32> -> vector<128x128xf32>
    %3 = arith.truncf %2 : vector<128x128xf32> to vector<128x128xbf16>
    %c0_3 = arith.constant 0 : index
    %c0_4 = arith.constant 0 : index
    %4 = vector.load %arg3[%c0_3, %c0_4] : memref<128x128xbf16, #tpu.memory_space<vmem>>, vector<128x128xbf16>
    tpu.vector_store %arg3[%c0_3, %c0_4], %3 {strides = array<i32>} : memref<128x128xbf16, #tpu.memory_space<vmem>>, vector<128x128xbf16>,
    %cst_5 = arith.constant dense<0.000000e+00> : vector<128xf32>
    %5 = vector.multi_reduction <add>, %2, %cst_5 [0] : vector<128x128xf32> to vector<128xf32>
    %6 = vector.shape_cast %5 : vector<128xf32> to vector<1x128xf32>
    %7 = arith.mulf %2, %2 : vector<128x128xf32>
    %cst_6 = arith.constant dense<0.000000e+00> : vector<128xf32>
    %8 = vector.multi_reduction <add>, %7, %cst_6 [0] : vector<128x128xf32> to vector<128xf32>
    %9 = vector.shape_cast %8 : vector<128xf32> to vector<1x128xf32>
    %10 = tpu.concatenate %6, %9 in 0 : vector<1x128xf32>, vector<1x128xf32> -> vector<2x128xf32>
    %11 = vector.shape_cast %10 : vector<2x128xf32> to vector<1x2x128xf32>
    %c0_7 = arith.constant 0 : index
    %c0_8 = arith.constant 0 : index
    %c0_9 = arith.constant 0 : index
    %12 = vector.load %arg4[%c0_7, %c0_8, %c0_9] : memref<1x2x128xf32, #tpu.memory_space<vmem>>, vector<1x2x128xf32>
    tpu.vector_store %arg4[%c0_7, %c0_8, %c0_9], %11 {strides = array<i32>} : memref<1x2x128xf32, #tpu.memory_space<vmem>>, vector<1x2x128xf32>,
    return
  }
  func.func @transform_0(%arg0: i32) -> (i32, i32) {
    %c0_i32 = arith.constant 0 : i32
    %c0_i32_0 = arith.constant 0 : i32
    return %arg0, %c0_i32 : i32, i32
  }
  func.func @transform_1(%arg0: i32) -> (i32, i32) {
    %c0_i32 = arith.constant 0 : i32
    %c0_i32_0 = arith.constant 0 : i32
    %c0_i32_1 = arith.constant 0 : i32
    return %c0_i32, %c0_i32_0 : i32, i32
  }
  func.func @transform_2(%arg0: i32) -> (i32, i32) {
    %c0_i32 = arith.constant 0 : i32
    %c0_i32_0 = arith.constant 0 : i32
    return %arg0, %c0_i32 : i32, i32
  }
  func.func @transform_3(%arg0: i32) -> (i32, i32, i32) {
    %c0_i32 = arith.constant 0 : i32
    %c0_i32_0 = arith.constant 0 : i32
    %c0_i32_1 = arith.constant 0 : i32
    return %arg0, %c0_i32, %c0_i32_0 : i32, i32, i32
  }
}

module attributes {stable_mosaic.version = 11 : i64} {
  func.func @_conv_kernel(%arg0: i32, %arg1: memref<128x512xbf16, #tpu.memory_space<vmem>>, %arg2: memref<512x128xbf16, #tpu.memory_space<vmem>>, %arg3: memref<128x128xbf16, #tpu.memory_space<vmem>>, %arg4: memref<1x2x128xf32, #tpu.memory_space<vmem>>) attributes {dimension_semantics = [#tpu.dimension_semantics<parallel>], iteration_bounds = array<i64: 1>, scalar_prefetch = 0 : i64, scratch_operands = 0 : i64, tpu.core_type = #tpu.core_type<tc>, window_params = [{transform_indices = @transform_0, window_bounds = array<i64: 128, 512>}, {pipeline_mode = #tpu.pipeline_mode<synchronous>, transform_indices = @transform_1, window_bounds = array<i64: 512, 128>}, {transform_indices = @transform_2, window_bounds = array<i64: 128, 128>}, {transform_indices = @transform_3, window_bounds = array<i64: 1, 2, 128>}]} {
    %c0 = arith.constant 0 : index
    %c0_0 = arith.constant 0 : index
    %0 = vector.load %arg1[%c0, %c0_0] : memref<128x512xbf16, #tpu.memory_space<vmem>>, vector<128x512xbf16>
    %c0_1 = arith.constant 0 : index
    %c0_2 = arith.constant 0 : index
    %1 = vector.load %arg2[%c0_1, %c0_2] : memref<512x128xbf16, #tpu.memory_space<vmem>>, vector<512x128xbf16>
    %cst = arith.constant dense<0.000000e+00> : vector<128x128xf32>
    %2 = tpu.matmul %0, %1, %cst {dimension_numbers = #tpu.dot_dimension_numbers<[1], [0], [0], [1], [0, 0, 1, 1], [], []>} : vector<128x512xbf16>, vector<512x128xbf16>, vector<128x128xf32> -> vector<128x128xf32>
    %3 = arith.truncf %2 : vector<128x128xf32> to vector<128x128xbf16>
    %c0_3 = arith.constant 0 : index
    %c0_4 = arith.constant 0 : index
    %4 = vector.load %arg3[%c0_3, %c0_4] : memref<128x128xbf16, #tpu.memory_space<vmem>>, vector<128x128xbf16>
    tpu.vector_store %arg3[%c0_3, %c0_4], %3 {strides = array<i32>} : memref<128x128xbf16, #tpu.memory_space<vmem>>, vector<128x128xbf16>,
    %cst_5 = arith.constant dense<0.000000e+00> : vector<128xf32>
    %5 = vector.multi_reduction <add>, %2, %cst_5 [0] : vector<128x128xf32> to vector<128xf32>
    %6 = vector.shape_cast %5 : vector<128xf32> to vector<1x128xf32>
    %7 = arith.mulf %2, %2 : vector<128x128xf32>
    %cst_6 = arith.constant dense<0.000000e+00> : vector<128xf32>
    %8 = vector.multi_reduction <add>, %7, %cst_6 [0] : vector<128x128xf32> to vector<128xf32>
    %9 = vector.shape_cast %8 : vector<128xf32> to vector<1x128xf32>
    %10 = tpu.concatenate %6, %9 in 0 : vector<1x128xf32>, vector<1x128xf32> -> vector<2x128xf32>
    %11 = vector.shape_cast %10 : vector<2x128xf32> to vector<1x2x128xf32>
    %c0_7 = arith.constant 0 : index
    %c0_8 = arith.constant 0 : index
    %c0_9 = arith.constant 0 : index
    %12 = vector.load %arg4[%c0_7, %c0_8, %c0_9] : memref<1x2x128xf32, #tpu.memory_space<vmem>>, vector<1x2x128xf32>
    tpu.vector_store %arg4[%c0_7, %c0_8, %c0_9], %11 {strides = array<i32>} : memref<1x2x128xf32, #tpu.memory_space<vmem>>, vector<1x2x128xf32>,
    return
  }
  func.func @transform_0(%arg0: i32) -> (i32, i32) {
    %c0_i32 = arith.constant 0 : i32
    %c0_i32_0 = arith.constant 0 : i32
    return %arg0, %c0_i32 : i32, i32
  }
  func.func @transform_1(%arg0: i32) -> (i32, i32) {
    %c0_i32 = arith.constant 0 : i32
    %c0_i32_0 = arith.constant 0 : i32
    %c0_i32_1 = arith.constant 0 : i32
    return %c0_i32, %c0_i32_0 : i32, i32
  }
  func.func @transform_2(%arg0: i32) -> (i32, i32) {
    %c0_i32 = arith.constant 0 : i32
    %c0_i32_0 = arith.constant 0 : i32
    return %arg0, %c0_i32 : i32, i32
  }
  func.func @transform_3(%arg0: i32) -> (i32, i32, i32) {
    %c0_i32 = arith.constant 0 : i32
    %c0_i32_0 = arith.constant 0 : i32
    %c0_i32_1 = arith.constant 0 : i32
    return %arg0, %c0_i32, %c0_i32_0 : i32, i32, i32
  }
}

module attributes {stable_mosaic.version = 11 : i64} {
  func.func @_head_kernel(%arg0: i32, %arg1: memref<128x128xbf16, #tpu.memory_space<vmem>>, %arg2: memref<1x128xf32, #tpu.memory_space<vmem>>, %arg3: memref<1x128xf32, #tpu.memory_space<vmem>>, %arg4: memref<128x128xbf16, #tpu.memory_space<vmem>>, %arg5: memref<1x128xf32, #tpu.memory_space<vmem>>, %arg6: memref<128x128xf32, #tpu.memory_space<vmem>>) attributes {dimension_semantics = [#tpu.dimension_semantics<parallel>], iteration_bounds = array<i64: 1>, scalar_prefetch = 0 : i64, scratch_operands = 0 : i64, tpu.core_type = #tpu.core_type<tc>, window_params = [{transform_indices = @transform_0, window_bounds = array<i64: 128, 128>}, {pipeline_mode = #tpu.pipeline_mode<synchronous>, transform_indices = @transform_1, window_bounds = array<i64: 1, 128>}, {pipeline_mode = #tpu.pipeline_mode<synchronous>, transform_indices = @transform_2, window_bounds = array<i64: 1, 128>}, {pipeline_mode = #tpu.pipeline_mode<synchronous>, transform_indices = @transform_3, window_bounds = array<i64: 128, 128>}, {pipeline_mode = #tpu.pipeline_mode<synchronous>, transform_indices = @transform_4, window_bounds = array<i64: 1, 128>}, {transform_indices = @transform_5, window_bounds = array<i64: 128, 128>}]} {
    %c0 = arith.constant 0 : index
    %c0_0 = arith.constant 0 : index
    %0 = vector.load %arg1[%c0, %c0_0] : memref<128x128xbf16, #tpu.memory_space<vmem>>, vector<128x128xbf16>
    %1 = arith.extf %0 : vector<128x128xbf16> to vector<128x128xf32>
    %c0_1 = arith.constant 0 : index
    %c0_2 = arith.constant 0 : index
    %2 = vector.load %arg2[%c0_1, %c0_2] : memref<1x128xf32, #tpu.memory_space<vmem>>, vector<1x128xf32>
    %3 = vector.broadcast %2 : vector<1x128xf32> to vector<128x128xf32>
    %4 = arith.mulf %1, %3 : vector<128x128xf32>
    %c0_3 = arith.constant 0 : index
    %c0_4 = arith.constant 0 : index
    %5 = vector.load %arg3[%c0_3, %c0_4] : memref<1x128xf32, #tpu.memory_space<vmem>>, vector<1x128xf32>
    %6 = vector.broadcast %5 : vector<1x128xf32> to vector<128x128xf32>
    %7 = arith.addf %4, %6 : vector<128x128xf32>
    %cst = arith.constant 0.000000e+00 : f32
    %8 = vector.broadcast %cst : f32 to vector<128x128xf32>
    %9 = arith.maximumf %7, %8 : vector<128x128xf32>
    %10 = arith.truncf %9 : vector<128x128xf32> to vector<128x128xbf16>
    %c0_5 = arith.constant 0 : index
    %c0_6 = arith.constant 0 : index
    %11 = vector.load %arg4[%c0_5, %c0_6] : memref<128x128xbf16, #tpu.memory_space<vmem>>, vector<128x128xbf16>
    %cst_7 = arith.constant dense<0.000000e+00> : vector<128x128xf32>
    %12 = tpu.matmul %10, %11, %cst_7 {dimension_numbers = #tpu.dot_dimension_numbers<[1], [0], [0], [1], [0, 0, 1, 1], [], []>} : vector<128x128xbf16>, vector<128x128xbf16>, vector<128x128xf32> -> vector<128x128xf32>
    %c0_8 = arith.constant 0 : index
    %c0_9 = arith.constant 0 : index
    %13 = vector.load %arg5[%c0_8, %c0_9] : memref<1x128xf32, #tpu.memory_space<vmem>>, vector<1x128xf32>
    %14 = vector.broadcast %13 : vector<1x128xf32> to vector<128x128xf32>
    %15 = arith.addf %12, %14 : vector<128x128xf32>
    %c0_10 = arith.constant 0 : index
    %c0_11 = arith.constant 0 : index
    %16 = vector.load %arg6[%c0_10, %c0_11] : memref<128x128xf32, #tpu.memory_space<vmem>>, vector<128x128xf32>
    tpu.vector_store %arg6[%c0_10, %c0_11], %15 {strides = array<i32>} : memref<128x128xf32, #tpu.memory_space<vmem>>, vector<128x128xf32>,
    return
  }
  func.func @transform_0(%arg0: i32) -> (i32, i32) {
    %c0_i32 = arith.constant 0 : i32
    %c0_i32_0 = arith.constant 0 : i32
    return %arg0, %c0_i32 : i32, i32
  }
  func.func @transform_1(%arg0: i32) -> (i32, i32) {
    %c0_i32 = arith.constant 0 : i32
    %c0_i32_0 = arith.constant 0 : i32
    %c0_i32_1 = arith.constant 0 : i32
    return %c0_i32, %c0_i32_0 : i32, i32
  }
  func.func @transform_2(%arg0: i32) -> (i32, i32) {
    %c0_i32 = arith.constant 0 : i32
    %c0_i32_0 = arith.constant 0 : i32
    %c0_i32_1 = arith.constant 0 : i32
    return %c0_i32, %c0_i32_0 : i32, i32
  }
  func.func @transform_3(%arg0: i32) -> (i32, i32) {
    %c0_i32 = arith.constant 0 : i32
    %c0_i32_0 = arith.constant 0 : i32
    %c0_i32_1 = arith.constant 0 : i32
    return %c0_i32, %c0_i32_0 : i32, i32
  }
  func.func @transform_4(%arg0: i32) -> (i32, i32) {
    %c0_i32 = arith.constant 0 : i32
    %c0_i32_0 = arith.constant 0 : i32
    %c0_i32_1 = arith.constant 0 : i32
    return %c0_i32, %c0_i32_0 : i32, i32
  }
  func.func @transform_5(%arg0: i32) -> (i32, i32) {
    %c0_i32 = arith.constant 0 : i32
    %c0_i32_0 = arith.constant 0 : i32
    return %arg0, %c0_i32 : i32, i32
  }
}

</mosaic_0001>

<bundles_post_ra>
// kernel: custom-call
= control target key start
LH: loop header
LB: loop body
LE: loop exit
PB: predicated region body
PF: predicated region fallthrough
CT: control target
= control target key end

     0   :  { %s6_s0 = inlined_call_operand.vmem [shape: u32[64,27], index: 0, kind: output, shape index: {}]  }

// kernel: squeeze.6
= control target key start
LH: loop header
LB: loop body
LE: loop exit
PB: predicated region body
PF: predicated region fallthrough
CT: control target
= control target key end

     0   :  { %s744_s10 = smov 127   ;;  %s745_s11 = smov 125   ;;  %vm356_vm0 = vcmask 834560   ;;  %vm370_vm1 = vcmask 842752   ;;  %vm384_vm2 = vcmask 850944   ;;  %vm397_vm3 = vcmask 883712   ;;  %s1330_s0 = inlined_call_operand.vmem [shape: s32[1728], index: 0, kind: input, shape index: {}]   ;;  %s1331_s1 = inlined_call_operand.vmem [shape: s32[64,27], index: 1, kind: output, shape index: {}]  }
   0x1   :  { %v533_v0 = vld [vmem:[%s1330_s0 + $0x4] sm:$0x1]   ;;  %v537_v1 = vld [vmem:[%s1330_s0 + $0xc] sm:$0x1]   ;;  %v535_v2 = vld [vmem:[%s1330_s0 + $0x8] sm:$0x1]  }
   0x2   :  { %7 = vrot.lane.b32.xlu0 %v533_v0, %s744_s10  ;;  %21 = vrot.lane.b32.xlu1 %v537_v1, %s745_s11  ;;  %v539_v3 = vld [vmem:[%s1330_s0 + $0x1] sm:$0x1]   ;;  %s746_s16 = smov 126   ;;  %s747_s17 = smov 121   ;;  %v541_v4 = vld [vmem:[%s1330_s0 + $0x5] sm:$0x1]  }
   0x3   :  { %v543_v5 = vld [vmem:[%s1330_s0 + $0x9] sm:$0x1]   ;;  %s748_s22 = smov 120   ;;  %s749_s23 = smov 119   ;;  %v545_v6 = vld [vmem:[%s1330_s0 + $0xd] sm:$0x1]  }
   0x4   :  { %v547_v7 = vld [vmem:[%s1330_s0 + $0x2] sm:$0x1]   ;;  %s750_s28 = smov 118   ;;  %s751_s29 = smov 114   ;;  %v549_v8 = vld [vmem:[%s1330_s0 + $0x6] sm:$0x1]  }
   0x5   :  { %v551_v9 = vld [vmem:[%s1330_s0 + $0xa] sm:$0x1]   ;;  %s752_s5 = smov 113   ;;  %s753_s6 = smov 112   ;;  %v553_v10 = vld [vmem:[%s1330_s0 + $0x3] sm:$0x1]  }
   0x6   :  { %14 = vrot.lane.b32.xlu0 %v535_v2, %s746_s16  ;;  %28 = vrot.lane.b32.xlu1 %v539_v3, %s747_s17  ;;  %v555_v11 = vld [vmem:[%s1330_s0 + $0x7] sm:$0x1]   ;;  %s754_s11 = smov 107   ;;  %s755_s12 = smov 106   ;;  %v557_v12 = vld [vmem:[%s1330_s0 + $0xb] sm:$0x1]  }
   0x7   :  { %v96_v13 = vld [vmem:[%s1330_s0] sm:$0x1]   ;;  %s756_s17 = smov 105   ;;  %s757_s18 = smov 101   ;;  %v560_v14 = vld [vmem:[%s1330_s0 + $0x4] sm:$0x1]  }
   0x8   :  { %v562_v15 = vld [vmem:[%s1330_s0 + $0x8] sm:$0x1]   ;;  %s759_s24 = smov 99   ;;  %v564_v16 = vld [vmem:[%s1330_s0 + $0xc] sm:$0x1]   ;;  %s761_s30 = smov 94  }
   0x9   :  { %v566_v17 = vld [vmem:[%s1330_s0 + $0x1] sm:$0x1]   ;;  %v568_v18 = vld [vmem:[%s1330_s0 + $0x5] sm:$0x1]   ;;  %v570_v19 = vld [vmem:[%s1330_s0 + $0x9] sm:$0x1]  }
   0xa   :  { %35 = vrot.lane.b32.xlu0 %v541_v4, %s748_s22  ;;  %42 = vrot.lane.b32.xlu1 %v543_v5, %s749_s23  ;;  %s758_s23 = smov 100   ;;  %s763_s7 = smov 92   ;;  %v572_v20 = vld [vmem:[%s1330_s0 + $0xd] sm:$0x1]   ;;  %v574_v21 = vld [vmem:[%s1330_s0 + $0x2] sm:$0x1]  }
   0xb   :  { %s765_s13 = smov 87   ;;  %v576_v22 = vld [vmem:[%s1330_s0 + $0x6] sm:$0x1]   ;;  %v578_v23 = vld [vmem:[%s1330_s0 + $0xa] sm:$0x1]   ;;  %s767_s19 = smov 85  }
   0xc   :  { %v580_v24 = vld [vmem:[%s1330_s0 + $0x3] sm:$0x1]   ;;  %v582_v25 = vld [vmem:[%s1330_s0 + $0x7] sm:$0x1]   ;;  %s769_s25 = smov 79   ;;  %s771_s2 = smov 74  }
   0xd   :  { %v584_v26 = vld [vmem:[%s1330_s0 + $0xb] sm:$0x1]   ;;  %v193_v27 = vld [vmem:[%s1330_s0] sm:$0x1]   ;;  %v587_v28 = vld [vmem:[%s1330_s0 + $0x4] sm:$0x1]  }
   0xe   :  { %49 = vrot.lane.b32.xlu0 %v545_v6, %s750_s28  ;;  %56 = vrot.lane.b32.xlu1 %v547_v7, %s751_s29  ;;  %s760_s29 = smov 98   ;;  %v589_v29 = vld [vmem:[%s1330_s0 + $0x8] sm:$0x1]   ;;  %s773_s8 = smov 72   ;;  %v591_v30 = vld [vmem:[%s1330_s0 + $0xc] sm:$0x1]  }
   0xf   :  { %v593_v31 = vld [vmem:[%s1330_s0 + $0x1] sm:$0x1]   ;;  %s775_s14 = smov 67   ;;  %v595_v32 = vld [vmem:[%s1330_s0 + $0x5] sm:$0x1]   ;;  %s776_s27 = smov 66  }
  0x10   :  { %v597_v33 = vld [vmem:[%s1330_s0 + $0x9] sm:$0x1]   ;;  %v630_v34 = vld [vmem:[%s1330_s0 + $0x3] sm:$0x1]   ;;  %v631_v35 = vld [vmem:[%s1330_s0 + $0x4] sm:$0x1]  }
  0x11   :  { %v634_v36 = vld [vmem:[%s1330_s0 + $0x7] sm:$0x1]   ;;  %v635_v37 = vld [vmem:[%s1330_s0 + $0x8] sm:$0x1]   ;;  %s777_s28 = smov 65   ;;  %v357_v38 = vsel %vm356_vm0, %v631_v35, %v630_v34  ;;  %s779_s9 = smov 25  }
  0x12   :  { %63 = vrot.lane.b32.xlu0 %v549_v8, %s752_s5  ;;  %70 = vrot.lane.b32.xlu1 %v551_v9, %s753_s6  ;;  %s762_s6 = smov 93   ;;  %v371_v39 = vsel %vm370_vm1, %v635_v37, %v634_v36  ;;  %v638_v40 = vld [vmem:[%s1330_s0 + $0xb] sm:$0x1]   ;;  %v639_v41 = vld [vmem:[%s1330_s0 + $0xc] sm:$0x1]   ;;  %vm411_vm4 = vcmask 891904  }
  0x13   :  { %v394_v42 = vld [vmem:[%s1330_s0] sm:$0x1]   ;;  %v642_v43 = vld [vmem:[%s1330_s0 + $0x1] sm:$0x1]   ;;  %v385_v44 = vsel %vm384_vm2, %v639_v41, %v638_v40  ;;  %v645_v46 = vld [vmem:[%s1330_s0 + $0x4] sm:$0x1]  }
  0x14   :  { %v398_v45 = vsel %vm397_vm3, %v642_v43, %v394_v42  ;;  %v646_v47 = vld [vmem:[%s1330_s0 + $0x5] sm:$0x1]   ;;  %v649_v48 = vld [vmem:[%s1330_s0 + $0x8] sm:$0x1]   ;;  %v650_v49 = vld [vmem:[%s1330_s0 + $0x9] sm:$0x1]  }
  0x15   :  { %vm425_vm5 = vcmask 900096   ;;  %v412_v50 = vsel %vm411_vm4, %v646_v47, %v645_v46  ;;  %v653_v52 = vld [vmem:[%s1330_s0 + $0xc] sm:$0x1]   ;;  %v654_v53 = vld [vmem:[%s1330_s0 + $0xd] sm:$0x1]   ;;  %vm439_vm6 = vcmask 908288  }
  0x16   :  { %77 = vrot.lane.b32.xlu0 %v553_v10, %s754_s11  ;;  %84 = vrot.lane.b32.xlu1 %v555_v11, %s755_s12  ;;  %s764_s12 = smov 91   ;;  %v426_v51 = vsel %vm425_vm5, %v650_v49, %v649_v48  ;;  %v657_v54 = vld [vmem:[%s1330_s0 + $0x1] sm:$0x1]   ;;  %v658_v55 = vld [vmem:[%s1330_s0 + $0x2] sm:$0x1]   ;;  %vm453_vm7 = vcmask 941056   ;;  %v440_v56 = vsel %vm439_vm6, %v654_v53, %v653_v52 }
  0x17   :  { %v454_v57 = vsel %vm453_vm7, %v658_v55, %v657_v54  ;;  %v661_v58 = vld [vmem:[%s1330_s0 + $0x5] sm:$0x1]   ;;  %v662_v59 = vld [vmem:[%s1330_s0 + $0x6] sm:$0x1]   ;;  %vm467_vm8 = vcmask 949248   ;;  %vm481_vm9 = vcmask 957440  }
  0x18   :  { %v665_v60 = vld [vmem:[%s1330_s0 + $0x9] sm:$0x1]   ;;  %v666_v61 = vld [vmem:[%s1330_s0 + $0xa] sm:$0x1]   ;;  %s785_s10 = smov 13   ;;  %v468_v62 = vsel %vm467_vm8, %v662_v59, %v661_v58  ;;  %vm495_vm10 = vcmask 998400  }
  0x19   :  { %v482_v63 = vsel %vm481_vm9, %v666_v61, %v665_v60  ;;  %v669_v0 = vld [vmem:[%s1330_s0 + $0x2] sm:$0x1]   ;;  %v670_v1 = vld [vmem:[%s1330_s0 + $0x3] sm:$0x1]   ;;  %v673_v2 = vld [vmem:[%s1330_s0 + $0x6] sm:$0x1]  }
  0x1a   :  { %91 = vrot.lane.b32.xlu0 %v557_v12, %s756_s17  ;;  %97 = vrot.lane.b32.xlu1 %v96_v13, %s757_s18  ;;  %s766_s18 = smov 86   ;;  %v674_v3 = vld [vmem:[%s1330_s0 + $0x7] sm:$0x1]   ;;  %vm509_vm11 = vcmask 1006592   ;;  %s787_s20 = smov 11   ;;  %v496_v4 = vsel %vm495_vm10, %v670_v1, %v669_v0  ;;  %vm523_vm12 = vcmask 1014784  }
  0x1b   :  { %v510_v5 = vsel %vm509_vm11, %v674_v3, %v673_v2  ;;  %v677_v6 = vld [vmem:[%s1330_s0 + $0xa] sm:$0x1]   ;;  %v678_v7 = vld [vmem:[%s1330_s0 + $0xb] sm:$0x1]   ;;  %s789_s26 = smov 5   ;;  %vm3_vm13 = vcmask 220160  }
  0x1c   :  { %v524_v8 = vsel %vm523_vm12, %v678_v7, %v677_v6  ;;  %v599_v9 = vld [vmem:[%s1330_s0 + $0x2] sm:$0x1]   ;;  %v601_v10 = vld [vmem:[%s1330_s0 + $0x6] sm:$0x1]   ;;  %v603_v11 = vld [vmem:[%s1330_s0 + $0xa] sm:$0x1]  }
  0x1d   :  { %v605_v12 = vld [vmem:[%s1330_s0 + $0x3] sm:$0x1]   ;;  %v607_v13 = vld [vmem:[%s1330_s0 + $0x7] sm:$0x1]   ;;  %s800_s5 = smov 44   ;;  %s802_s15 = smov 39  }
  0x1e   :  { %104 = vrot.lane.b32.xlu0 %v560_v14, %s758_s23  ;;  %111 = vrot.lane.b32.xlu1 %v562_v15, %s759_s24  ;;  %s768_s24 = smov 80   ;;  %v609_v14 = vld [vmem:[%s1330_s0 + $0xb] sm:$0x1]   ;;  %v283_v15 = vld [vmem:[%s1330_s0] sm:$0x1]   ;;  %s803_s16 = smov 38  }
  0x1f   :  { %s806_s3 = smov 31   ;;  %vm360_vm14 = vcmask 211968   ;;  %vm374_vm15 = vcmask 203776   ;;  %vm363_vm0 = vcmask 220368   ;;  %vm377_vm1 = vcmask 220360  }
  0x20   :  { %vm388_vm2 = vcmask 195584   ;;  %vm401_vm3 = vcmask 162816   ;;  %vm391_vm4 = vcmask 220352   ;;  %vm404_vm5 = vcmask 220320  }
  0x21   :  { %vm415_vm6 = vcmask 154624   ;;  %vm429_vm7 = vcmask 146432   ;;  %vm418_vm8 = vcmask 220312   ;;  %vm432_vm9 = vcmask 220304  }
  0x22   :  { %118 = vrot.lane.b32.xlu0 %v564_v16, %s760_s29  ;;  %125 = vrot.lane.b32.xlu1 %v566_v17, %s761_s30  ;;  %s770_s30 = smov 78   ;;  %s783_s29 = smov 18   ;;  %v612_v16 = vld [vmem:[%s1330_s0 + $0x4] sm:$0x1]   ;;  %v614_v17 = vld [vmem:[%s1330_s0 + $0x8] sm:$0x1]  }
  0x23   :  { %vm443_vm10 = vcmask 138240   ;;  %vm457_vm11 = vcmask 105472   ;;  %vm446_vm12 = vcmask 220296  }
  0x26   :  { %132 = vrot.lane.b32.xlu0 %v568_v18, %s762_s6  ;;  %139 = vrot.lane.b32.xlu1 %v570_v19, %s763_s7  ;;  %s772_s7 = smov 73   ;;  %s792_s6 = smov 59   ;;  %v616_v18 = vld [vmem:[%s1330_s0 + $0xc] sm:$0x1]   ;;  %v618_v19 = vld [vmem:[%s1330_s0 + $0x1] sm:$0x1]  }
  0x2a   :  { %146 = vrot.lane.b32.xlu0 %v572_v20, %s764_s12  ;;  %153 = vrot.lane.b32.xlu1 %v574_v21, %s765_s13  ;;  %s774_s13 = smov 71   ;;  %s794_s12 = smov 53   ;;  %v2_v20 = vld [vmem:[%s1330_s0] sm:$0x1]   ;;  %v620_v21 = vld [vmem:[%s1330_s0 + $0x5] sm:$0x1]  }
  0x2b   :  { %4 = vst.msk [vmem:[%s1331_s1] sm:$0x1] %vm3_vm13, %v2_v20  }
  0x2e   :  { %160 = vrot.lane.b32.xlu0 %v576_v22, %s766_s18  ;;  %167 = vrot.lane.b32.xlu1 %v578_v23, %s767_s19  ;;  %s780_s18 = smov 24   ;;  %s781_s19 = smov 20   ;;  %v622_v22 = vld [vmem:[%s1330_s0 + $0x9] sm:$0x1]  }
  0x32   :  { %174 = vrot.lane.b32.xlu0 %v580_v24, %s768_s24  ;;  %181 = vrot.lane.b32.xlu1 %v582_v25, %s769_s25  ;;  %s788_s25 = smov 6   ;;  %s798_s24 = smov 46   ;;  %v624_v25 = vld [vmem:[%s1330_s0 + $0x2] sm:$0x1]  }
  0x36   :  { %188 = vrot.lane.b32.xlu0 %v584_v26, %s770_s30  ;;  %194 = vrot.lane.b32.xlu1 %v193_v27, %s771_s2  ;;  %s791_s30 = smov 60   ;;  %v626_v26 = vld [vmem:[%s1330_s0 + $0x6] sm:$0x1]  }
  0x3a   :  { %201 = vrot.lane.b32.xlu0 %v587_v28, %s772_s7  ;;  %208 = vrot.lane.b32.xlu1 %v589_v29, %s773_s8  ;;  %s778_s8 = smov 26   ;;  %s793_s7 = smov 58   ;;  %v628_v29 = vld [vmem:[%s1330_s0 + $0xa] sm:$0x1]  }
  0x3e   :  { %215 = vrot.lane.b32.xlu0 %v591_v30, %s774_s13  ;;  %222 = vrot.lane.b32.xlu1 %v593_v31, %s775_s14  ;;  %s795_s13 = smov 52  }
  0x42   :  { %229 = vrot.lane.b32.xlu0 %v595_v32, %s776_s27  ;;  %236 = vrot.lane.b32.xlu1 %v597_v33, %s777_s28  ;;  %s782_s28 = smov 19  }
  0x46   :  { %358 = vrot.lane.b32.xlu0 %v357_v38, %s778_s8  ;;  %372 = vrot.lane.b32.xlu1 %v371_v39, %s779_s9  ;;  %s784_s9 = smov 17  }
  0x4a   :  { %386 = vrot.lane.b32.xlu0 %v385_v44, %s780_s18  ;;  %399 = vrot.lane.b32.xlu1 %v398_v45, %s781_s19  ;;  %s786_s19 = smov 12   ;;  %s796_s18 = smov 51  }
  0x4e   :  { %413 = vrot.lane.b32.xlu0 %v412_v50, %s782_s28  ;;  %427 = vrot.lane.b32.xlu1 %v426_v51, %s783_s29  ;;  %s790_s29 = smov 4  }
  0x52   :  { %441 = vrot.lane.b32.xlu0 %v440_v56, %s784_s9  ;;  %455 = vrot.lane.b32.xlu1 %v454_v57, %s785_s10 }
  0x56   :  { %469 = vrot.lane.b32.xlu0 %v468_v62, %s786_s19  ;;  %483 = vrot.lane.b32.xlu1 %v482_v63, %s787_s20  ;;  %s797_s19 = smov 47  }
  0x5a   :  { %497 = vrot.lane.b32.xlu0 %v496_v4, %s788_s25  ;;  %511 = vrot.lane.b32.xlu1 %v510_v5, %s789_s26  ;;  %s799_s25 = smov 45   ;;  %s805_s26 = smov 32  }
  0x5e   :  { %525 = vrot.lane.b32.xlu0 %v524_v8, %s790_s29  ;;  %243 = vrot.lane.b32.xlu1 %v599_v9, %s791_s30 }
  0x62   :  { %250 = vrot.lane.b32.xlu0 %v601_v10, %s792_s6  ;;  %257 = vrot.lane.b32.xlu1 %v603_v11, %s793_s7  ;;  %s801_s6 = smov 40  }
  0x66   :  { %264 = vrot.lane.b32.xlu0 %v605_v12, %s794_s12  ;;  %271 = vrot.lane.b32.xlu1 %v607_v13, %s795_s13 }
  0x6a   :  { %278 = vrot.lane.b32.xlu0 %v609_v14, %s796_s18  ;;  %284 = vrot.lane.b32.xlu1 %v283_v15, %s797_s19 }
  0x6e   :  { %291 = vrot.lane.b32.xlu0 %v612_v16, %s798_s24  ;;  %298 = vrot.lane.b32.xlu1 %v614_v17, %s799_s25  ;;  %s804_s25 = smov 33  }
  0x72   :  { %305 = vrot.lane.b32.xlu0 %v616_v18, %s800_s5  ;;  %312 = vrot.lane.b32.xlu1 %v618_v19, %s801_s6 }
  0x74   :  { %v8_v23 = vpop.permute.xlu0 %7   ;;  %v22_v24 = vpop.permute.xlu1 %21  }
  0x75   :  { %534 = vst.msk [vmem:[%s1331_s1 + $0x13] sm:$0x1] %vm3_vm13, %v8_v23   ;;  %538 = vst.msk [vmem:[%s1331_s1 + $0x39] sm:$0x1] %vm3_vm13, %v22_v24  }
  0x76   :  { %319 = vrot.lane.b32.xlu0 %v620_v21, %s802_s15  ;;  %326 = vrot.lane.b32.xlu1 %v622_v22, %s803_s16 }
  0x78   :  { %v15_v27 = vpop.permute.xlu0 %14   ;;  %v29_v28 = vpop.permute.xlu1 %28  }
  0x79   :  { %536 = vst.msk [vmem:[%s1331_s1 + $0x26] sm:$0x1] %vm3_vm13, %v15_v27   ;;  %540 = vst.msk [vmem:[%s1331_s1 + $0x5] sm:$0x1] %vm3_vm13, %v29_v28  }
  0x7a   :  { %333 = vrot.lane.b32.xlu0 %v624_v25, %s804_s25  ;;  %340 = vrot.lane.b32.xlu1 %v626_v26, %s805_s26 }
  0x7c   :  { %v36_v30 = vpop.permute.xlu0 %35   ;;  %v43_v31 = vpop.permute.xlu1 %42  }
  0x7d   :  { %542 = vst.msk [vmem:[%s1331_s1 + $0x18] sm:$0x1] %vm3_vm13, %v36_v30   ;;  %544 = vst.msk [vmem:[%s1331_s1 + $0x2b] sm:$0x1] %vm3_vm13, %v43_v31  }
  0x7e   :  { %347 = vrot.lane.b32.xlu0 %v628_v29, %s806_s3 }
  0x80   :  { %v50_v32 = vpop.permute.xlu0 %49   ;;  %v57_v33 = vpop.permute.xlu1 %56  }
  0x81   :  { %546 = vst.msk [vmem:[%s1331_s1 + $0x3e] sm:$0x1] %vm3_vm13, %v50_v32   ;;  %548 = vst.msk [vmem:[%s1331_s1 + $0xa] sm:$0x1] %vm3_vm13, %v57_v33  }
  0x84   :  { %v64_v34 = vpop.permute.xlu0 %63   ;;  %v71_v35 = vpop.permute.xlu1 %70  }
  0x85   :  { %550 = vst.msk [vmem:[%s1331_s1 + $0x1d] sm:$0x1] %vm3_vm13, %v64_v34   ;;  %552 = vst.msk [vmem:[%s1331_s1 + $0x30] sm:$0x1] %vm3_vm13, %v71_v35  }
  0x88   :  { %v78_v36 = vpop.permute.xlu0 %77   ;;  %v85_v37 = vpop.permute.xlu1 %84  }
  0x89   :  { %554 = vst.msk [vmem:[%s1331_s1 + $0xf] sm:$0x1] %vm3_vm13, %v78_v36   ;;  %556 = vst.msk [vmem:[%s1331_s1 + $0x22] sm:$0x1] %vm3_vm13, %v85_v37  }
  0x8c   :  { %v92_v38 = vpop.permute.xlu0 %91   ;;  %v98_v39 = vpop.permute.xlu1 %97  }
  0x8d   :  { %558 = vst.msk [vmem:[%s1331_s1 + $0x35] sm:$0x1] %vm3_vm13, %v92_v38   ;;  %559 = vst.msk [vmem:[%s1331_s1 + $0x1] sm:$0x1] %vm3_vm13, %v98_v39  }
  0x90   :  { %v105_v40 = vpop.permute.xlu0 %104   ;;  %v112_v41 = vpop.permute.xlu1 %111  }
  0x91   :  { %561 = vst.msk [vmem:[%s1331_s1 + $0x14] sm:$0x1] %vm3_vm13, %v105_v40   ;;  %563 = vst.msk [vmem:[%s1331_s1 + $0x27] sm:$0x1] %vm3_vm13, %v112_v41  }
  0x94   :  { %v119_v42 = vpop.permute.xlu0 %118   ;;  %v126_v43 = vpop.permute.xlu1 %125  }
  0x95   :  { %565 = vst.msk [vmem:[%s1331_s1 + $0x3a] sm:$0x1] %vm3_vm13, %v119_v42   ;;  %567 = vst.msk [vmem:[%s1331_s1 + $0x6] sm:$0x1] %vm3_vm13, %v126_v43  }
  0x98   :  { %v133_v44 = vpop.permute.xlu0 %132   ;;  %v140_v45 = vpop.permute.xlu1 %139  }
  0x99   :  { %569 = vst.msk [vmem:[%s1331_s1 + $0x19] sm:$0x1] %vm3_vm13, %v133_v44   ;;  %571 = vst.msk [vmem:[%s1331_s1 + $0x2c] sm:$0x1] %vm3_vm13, %v140_v45  }
  0x9c   :  { %v147_v46 = vpop.permute.xlu0 %146   ;;  %v154_v47 = vpop.permute.xlu1 %153  }
  0x9d   :  { %573 = vst.msk [vmem:[%s1331_s1 + $0x3f] sm:$0x1] %vm3_vm13, %v147_v46   ;;  %575 = vst.msk [vmem:[%s1331_s1 + $0xb] sm:$0x1] %vm3_vm13, %v154_v47  }
  0xa0   :  { %v161_v48 = vpop.permute.xlu0 %160   ;;  %v168_v49 = vpop.permute.xlu1 %167  }
  0xa1   :  { %577 = vst.msk [vmem:[%s1331_s1 + $0x1e] sm:$0x1] %vm3_vm13, %v161_v48   ;;  %579 = vst.msk [vmem:[%s1331_s1 + $0x31] sm:$0x1] %vm3_vm13, %v168_v49  }
  0xa4   :  { %v175_v50 = vpop.permute.xlu0 %174   ;;  %v182_v51 = vpop.permute.xlu1 %181  }
  0xa5   :  { %581 = vst.msk [vmem:[%s1331_s1 + $0x10] sm:$0x1] %vm3_vm13, %v175_v50   ;;  %583 = vst.msk [vmem:[%s1331_s1 + $0x23] sm:$0x1] %vm3_vm13, %v182_v51  }
  0xa8   :  { %v189_v52 = vpop.permute.xlu0 %188   ;;  %v195_v53 = vpop.permute.xlu1 %194  }
  0xa9   :  { %585 = vst.msk [vmem:[%s1331_s1 + $0x36] sm:$0x1] %vm3_vm13, %v189_v52   ;;  %586 = vst.msk [vmem:[%s1331_s1 + $0x2] sm:$0x1] %vm3_vm13, %v195_v53  }
  0xac   :  { %v202_v54 = vpop.permute.xlu0 %201   ;;  %v209_v55 = vpop.permute.xlu1 %208  }
  0xad   :  { %588 = vst.msk [vmem:[%s1331_s1 + $0x15] sm:$0x1] %vm3_vm13, %v202_v54   ;;  %590 = vst.msk [vmem:[%s1331_s1 + $0x28] sm:$0x1] %vm3_vm13, %v209_v55  }
  0xb0   :  { %v216_v56 = vpop.permute.xlu0 %215   ;;  %v223_v57 = vpop.permute.xlu1 %222  }
  0xb1   :  { %592 = vst.msk [vmem:[%s1331_s1 + $0x3b] sm:$0x1] %vm3_vm13, %v216_v56   ;;  %594 = vst.msk [vmem:[%s1331_s1 + $0x7] sm:$0x1] %vm3_vm13, %v223_v57  }
  0xb4   :  { %v230_v58 = vpop.permute.xlu0 %229   ;;  %v237_v59 = vpop.permute.xlu1 %236  }
  0xb5   :  { %596 = vst.msk [vmem:[%s1331_s1 + $0x1a] sm:$0x1] %vm3_vm13, %v230_v58   ;;  %598 = vst.msk [vmem:[%s1331_s1 + $0x2d] sm:$0x1] %vm3_vm13, %v237_v59  }
  0xb8   :  { %v359_v60 = vpop.permute.xlu0 %358   ;;  %v373_v61 = vpop.permute.xlu1 %372  }
  0xb9   :  { %632 = vst.msk [vmem:[%s1331_s1 + $0x12] sm:$0x1] %vm360_vm14, %v359_v60   ;;  %vm460_vm14 = vcmask 220264  }
  0xba   :  { %636 = vst.msk [vmem:[%s1331_s1 + $0x25] sm:$0x1] %vm374_vm15, %v373_v61   ;;  %vm471_vm15 = vcmask 97280  }
  0xbb   :  { %633 = vst.msk [vmem:[%s1331_s1 + $0x12] sm:$0x1] %vm363_vm0, %v359_v60   ;;  %vm485_vm0 = vcmask 89088  }
  0xbc   :  { %637 = vst.msk [vmem:[%s1331_s1 + $0x25] sm:$0x1] %vm377_vm1, %v373_v61   ;;  %v387_v62 = vpop.permute.xlu0 %386   ;;  %v400_v63 = vpop.permute.xlu1 %399   ;;  %vm474_vm1 = vcmask 220256  }
  0xbd   :  { %640 = vst.msk [vmem:[%s1331_s1 + $0x38] sm:$0x1] %vm388_vm2, %v387_v62   ;;  %vm488_vm2 = vcmask 220248  }
  0xbe   :  { %643 = vst.msk [vmem:[%s1331_s1 + $0x4] sm:$0x1] %vm401_vm3, %v400_v63   ;;  %vm499_vm3 = vcmask 48128  }
  0xbf   :  { %641 = vst.msk [vmem:[%s1331_s1 + $0x38] sm:$0x1] %vm391_vm4, %v387_v62   ;;  %vm513_vm4 = vcmask 39936  }
  0xc0   :  { %644 = vst.msk [vmem:[%s1331_s1 + $0x4] sm:$0x1] %vm404_vm5, %v400_v63   ;;  %v414_v0 = vpop.permute.xlu0 %413   ;;  %v428_v1 = vpop.permute.xlu1 %427   ;;  %vm502_vm5 = vcmask 220208  }
  0xc1   :  { %647 = vst.msk [vmem:[%s1331_s1 + $0x17] sm:$0x1] %vm415_vm6, %v414_v0   ;;  %vm516_vm6 = vcmask 220200  }
  0xc2   :  { %651 = vst.msk [vmem:[%s1331_s1 + $0x2a] sm:$0x1] %vm429_vm7, %v428_v1   ;;  %vm527_vm7 = vcmask 31744  }
  0xc3   :  { %648 = vst.msk [vmem:[%s1331_s1 + $0x17] sm:$0x1] %vm418_vm8, %v414_v0   ;;  %vm530_vm8 = vcmask 220192  }
  0xc4   :  { %652 = vst.msk [vmem:[%s1331_s1 + $0x2a] sm:$0x1] %vm432_vm9, %v428_v1   ;;  %v442_v2 = vpop.permute.xlu0 %441   ;;  %v456_v3 = vpop.permute.xlu1 %455  }
  0xc5   :  { %655 = vst.msk [vmem:[%s1331_s1 + $0x3d] sm:$0x1] %vm443_vm10, %v442_v2  }
  0xc6   :  { %659 = vst.msk [vmem:[%s1331_s1 + $0x9] sm:$0x1] %vm457_vm11, %v456_v3  }
  0xc7   :  { %656 = vst.msk [vmem:[%s1331_s1 + $0x3d] sm:$0x1] %vm446_vm12, %v442_v2  }
  0xc8   :  { %660 = vst.msk [vmem:[%s1331_s1 + $0x9] sm:$0x1] %vm460_vm14, %v456_v3   ;;  %v470_v4 = vpop.permute.xlu0 %469   ;;  %v484_v5 = vpop.permute.xlu1 %483  }
  0xc9   :  { %663 = vst.msk [vmem:[%s1331_s1 + $0x1c] sm:$0x1] %vm471_vm15, %v470_v4  }
  0xca   :  { %667 = vst.msk [vmem:[%s1331_s1 + $0x2f] sm:$0x1] %vm485_vm0, %v484_v5  }
  0xcb   :  { %664 = vst.msk [vmem:[%s1331_s1 + $0x1c] sm:$0x1] %vm474_vm1, %v470_v4  }
  0xcc   :  { %668 = vst.msk [vmem:[%s1331_s1 + $0x2f] sm:$0x1] %vm488_vm2, %v484_v5   ;;  %v498_v6 = vpop.permute.xlu0 %497   ;;  %v512_v7 = vpop.permute.xlu1 %511  }
  0xcd   :  { %671 = vst.msk [vmem:[%s1331_s1 + $0xe] sm:$0x1] %vm499_vm3, %v498_v6  }
  0xce   :  { %675 = vst.msk [vmem:[%s1331_s1 + $0x21] sm:$0x1] %vm513_vm4, %v512_v7  }
  0xcf   :  { %672 = vst.msk [vmem:[%s1331_s1 + $0xe] sm:$0x1] %vm502_vm5, %v498_v6  }
  0xd0   :  { %676 = vst.msk [vmem:[%s1331_s1 + $0x21] sm:$0x1] %vm516_vm6, %v512_v7   ;;  %v526_v8 = vpop.permute.xlu0 %525   ;;  %v244_v9 = vpop.permute.xlu1 %243  }
  0xd1   :  { %679 = vst.msk [vmem:[%s1331_s1 + $0x34] sm:$0x1] %vm527_vm7, %v526_v8  }
  0xd2   :  { %600 = vst.msk [vmem:[%s1331_s1 + $0xc] sm:$0x1] %vm3_vm13, %v244_v9  }
  0xd3   :  { %680 = vst.msk [vmem:[%s1331_s1 + $0x34] sm:$0x1] %vm530_vm8, %v526_v8  }
  0xd4   :  { %v251_v10 = vpop.permute.xlu0 %250   ;;  %v258_v11 = vpop.permute.xlu1 %257  }
  0xd5   :  { %602 = vst.msk [vmem:[%s1331_s1 + $0x1f] sm:$0x1] %vm3_vm13, %v251_v10   ;;  %604 = vst.msk [vmem:[%s1331_s1 + $0x32] sm:$0x1] %vm3_vm13, %v258_v11  }
  0xd8   :  { %v265_v12 = vpop.permute.xlu0 %264   ;;  %v272_v13 = vpop.permute.xlu1 %271  }
  0xd9   :  { %606 = vst.msk [vmem:[%s1331_s1 + $0x11] sm:$0x1] %vm3_vm13, %v265_v12   ;;  %608 = vst.msk [vmem:[%s1331_s1 + $0x24] sm:$0x1] %vm3_vm13, %v272_v13  }
  0xdc   :  { %v279_v14 = vpop.permute.xlu0 %278   ;;  %v285_v15 = vpop.permute.xlu1 %284  }
  0xdd   :  { %610 = vst.msk [vmem:[%s1331_s1 + $0x37] sm:$0x1] %vm3_vm13, %v279_v14   ;;  %611 = vst.msk [vmem:[%s1331_s1 + $0x3] sm:$0x1] %vm3_vm13, %v285_v15  }
  0xe0   :  { %v292_v16 = vpop.permute.xlu0 %291   ;;  %v299_v17 = vpop.permute.xlu1 %298  }
  0xe1   :  { %613 = vst.msk [vmem:[%s1331_s1 + $0x16] sm:$0x1] %vm3_vm13, %v292_v16   ;;  %615 = vst.msk [vmem:[%s1331_s1 + $0x29] sm:$0x1] %vm3_vm13, %v299_v17  }
  0xe4   :  { %v306_v18 = vpop.permute.xlu0 %305   ;;  %v313_v19 = vpop.permute.xlu1 %312  }
  0xe5   :  { %617 = vst.msk [vmem:[%s1331_s1 + $0x3c] sm:$0x1] %vm3_vm13, %v306_v18   ;;  %619 = vst.msk [vmem:[%s1331_s1 + $0x8] sm:$0x1] %vm3_vm13, %v313_v19  }
  0xe8   :  { %v320_v20 = vpop.permute.xlu0 %319   ;;  %v327_v21 = vpop.permute.xlu1 %326  }
  0xe9   :  { %621 = vst.msk [vmem:[%s1331_s1 + $0x1b] sm:$0x1] %vm3_vm13, %v320_v20   ;;  %623 = vst.msk [vmem:[%s1331_s1 + $0x2e] sm:$0x1] %vm3_vm13, %v327_v21  }
  0xec   :  { %v334_v22 = vpop.permute.xlu0 %333   ;;  %v341_v23 = vpop.permute.xlu1 %340  }
  0xed   :  { %625 = vst.msk [vmem:[%s1331_s1 + $0xd] sm:$0x1] %vm3_vm13, %v334_v22   ;;  %627 = vst.msk [vmem:[%s1331_s1 + $0x20] sm:$0x1] %vm3_vm13, %v341_v23  }
  0xf0   :  { %v348_v24 = vpop.permute.xlu0 %347  }
  0xf1   :  { %629 = vst.msk [vmem:[%s1331_s1 + $0x33] sm:$0x1] %vm3_vm13, %v348_v24  }

// kernel: unet_scn_forward.3
= control target key start
LH: loop header
LB: loop body
LE: loop exit
PB: predicated region body
PF: predicated region fallthrough
CT: control target
= control target key end

     0   :  { %vm377_vm0 = vcmask 1040384   ;;  %s658_s1 = inlined_call_operand.vmem [shape: bf16[128,128], index: 1, kind: input, shape index: {}]   ;;  %s659_s0 = inlined_call_operand.vmem [shape: bf16[128,128], index: 0, kind: input, shape index: {}]   ;;  %s660_s2 = inlined_call_operand.vmem [shape: bf16[128,128], index: 2, kind: output, shape index: {0}]   ;;  %s661_s3 = inlined_call_operand.vmem [shape: f32[1,2,128], index: 3, kind: output, shape index: {1}]  }
   0x1   :  { %v547_v0 = vld [vmem:[%s658_s1] sm:$0xff]   ;;  %v548_v1 = vld [vmem:[%s658_s1 + $0x8] sm:$0xff]   ;;  %v549_v2 = vld [vmem:[%s658_s1 + $0x10] sm:$0xff]  }
   0x2   :  { %499 = vmatprep.subr.bf16.mxu0 %v547_v0  ;;  %531 = vmatprep.subr.bf16.mxu1 %v547_v0  ;;  %v550_v3 = vld [vmem:[%s658_s1 + $0x18] sm:$0xff]   ;;  %v555_v4 = vld [vmem:[%s659_s0] sm:$0xff]   ;;  %v552_v7 = vld [vmem:[%s658_s1 + $0x28] sm:$0xff]  }
   0x3   :  { %500 = vmatpush3.bf16.msra.mxu0 %v547_v0  ;;  %539 = vmatpush3.bf16.msra.mxu1 %v547_v0  ;;  %v551_v5 = vld [vmem:[%s658_s1 + $0x20] sm:$0xff]   ;;  %v553_v8 = vld [vmem:[%s658_s1 + $0x30] sm:$0xff]   ;;  %v554_v9 = vld [vmem:[%s658_s1 + $0x38] sm:$0xff]  }
   0x4   :  { %501 = vmatprep.subr.bf16.mxu0 %v548_v1  ;;  %532 = vmatprep.subr.bf16.mxu1 %v548_v1  ;;  %v559_v6 = vld [vmem:[%s659_s0 + $0x20] sm:$0xff]   ;;  %v556_v10 = vld [vmem:[%s659_s0 + $0x8] sm:$0xff]   ;;  %v557_v12 = vld [vmem:[%s659_s0 + $0x10] sm:$0xff]  }
   0x5   :  { %515 = vmatprep.mubr.bf16.mxu0 %v555_v4  ;;  %523 = vmatprep.mubr.bf16.mxu1 %v559_v6  ;;  %v560_v11 = vld [vmem:[%s659_s0 + $0x28] sm:$0xff]   ;;  %v561_v13 = vld [vmem:[%s659_s0 + $0x30] sm:$0xff]   ;;  %v558_v14 = vld [vmem:[%s659_s0 + $0x18] sm:$0xff]  }
   0x6   :  { %v562_v15 = vld [vmem:[%s659_s0 + $0x38] sm:$0xff]  }
   0x7   :  { %502 = vmatpush3.bf16.msra.mxu0 %v548_v1  ;;  %540 = vmatpush3.bf16.msra.mxu1 %v548_v1 }
   0x8   :  { %503 = vmatprep.subr.bf16.mxu0 %v549_v2  ;;  %533 = vmatprep.subr.bf16.mxu1 %v549_v2 }
   0xb   :  { %504 = vmatpush3.bf16.msra.mxu0 %v549_v2  ;;  %541 = vmatpush3.bf16.msra.mxu1 %v549_v2 }
   0xc   :  { %505 = vmatprep.subr.bf16.mxu0 %v550_v3  ;;  %534 = vmatprep.subr.bf16.mxu1 %v550_v3 }
   0xf   :  { %506 = vmatpush3.bf16.msra.mxu0 %v550_v3  ;;  %542 = vmatpush3.bf16.msra.mxu1 %v550_v3 }
  0x10   :  { %507 = vmatprep.subr.bf16.mxu0 %v551_v5  ;;  %535 = vmatprep.subr.bf16.mxu1 %v551_v5 }
  0x13   :  { %508 = vmatpush3.bf16.msra.mxu0 %v551_v5  ;;  %543 = vmatpush3.bf16.msra.mxu1 %v551_v5 }
  0x14   :  { %509 = vmatprep.subr.bf16.mxu0 %v552_v7  ;;  %536 = vmatprep.subr.bf16.mxu1 %v552_v7 }
  0x17   :  { %510 = vmatpush3.bf16.msra.mxu0 %v552_v7  ;;  %544 = vmatpush3.bf16.msra.mxu1 %v552_v7 }
  0x18   :  { %511 = vmatprep.subr.bf16.mxu0 %v553_v8  ;;  %537 = vmatprep.subr.bf16.mxu1 %v553_v8 }
  0x1b   :  { %512 = vmatpush3.bf16.msra.mxu0 %v553_v8  ;;  %545 = vmatpush3.bf16.msra.mxu1 %v553_v8 }
  0x1c   :  { %513 = vmatprep.subr.bf16.mxu0 %v554_v9  ;;  %538 = vmatprep.subr.bf16.mxu1 %v554_v9 }
  0x1f   :  { %514 = vmatpush3.bf16.msra.mxu0 %v554_v9  ;;  %546 = vmatpush3.bf16.msra.mxu1 %v554_v9 }
  0x22   :  { %516 = vmatmul.mubr.bf16.vlgmr.msra.gmra.mrb[0].mxu0 %v556_v10  ;;  %524 = vmatmul.mubr.bf16.vlgmr.msra.gmra.mrb[0].mxu1 %v560_v11 }
  0x23   :  { %519 = vmatprep.mubr.bf16.mxu0 %v557_v12  ;;  %527 = vmatprep.mubr.bf16.mxu1 %v561_v13 }
  0x2a   :  { %520 = vmatmul.mubr.bf16.gmra.mrb[4].mxu0 %v558_v14  ;;  %528 = vmatmul.mubr.bf16.gmra.mrb[4].mxu1 %v562_v15 }
  0xf5   :  { %v517_v16 = vpop.f32.mrb[0].mxu0  ;;  %v525_v17 = vpop.f32.mrb[0].mxu1 }
  0xf6   :  { %v176_v18 = vpop.f32.mrb[1].mxu0  ;;  %v208_v19 = vpop.f32.mrb[1].mxu1  ;;  %v342_v31 = vmul.f32 %v517_v16, %v517_v16  ;;  %v350_v3 = vmul.f32 %v525_v17, %v525_v17 }
  0xf7   :  { %v518_v20 = vpop.f32.mrb[2].mxu0  ;;  %v526_v21 = vpop.f32.mrb[2].mxu1  ;;  %v340_v22 = vmul.f32 %v176_v18, %v176_v18  ;;  %v348_v61 = vmul.f32 %v208_v19, %v208_v19 }
  0xf8   :  { %v444_v23 = vpack.c.bf16 %v518_v20, %v517_v16  ;;  %v179_v24 = vpop.f32.mrb[3].mxu0  ;;  %v464_v25 = vpack.c.bf16 %v526_v21, %v525_v17  ;;  %v211_v26 = vpop.f32.mrb[3].mxu1  ;;  %v343_v34 = vmul.f32 %v518_v20, %v518_v20  ;;  %v351_v6 = vmul.f32 %v526_v21, %v526_v21 }
  0xf9   :  { %v439_v27 = vpack.c.bf16 %v179_v24, %v176_v18  ;;  %v319_v28 = vadd.f32 %v179_v24, %v176_v18  ;;  %v341_v29 = vmul.f32 %v179_v24, %v179_v24  ;;  %v459_v30 = vpack.c.bf16 %v211_v26, %v208_v19 }
  0xfa   :  { %476 = vst [vmem:[%s660_s2 + $0x8] sm:$0xff] %v444_v23   ;;  %480 = vst [vmem:[%s660_s2 + $0x28] sm:$0xff] %v464_v25   ;;  %v349_v2 = vmul.f32 %v211_v26, %v211_v26 }
  0xfb   :  { %440 = vst [vmem:[%s660_s2] sm:$0xff] %v439_v27   ;;  %v320_v32 = vadd.f32 %v517_v16, %v319_v28  ;;  %v356_v33 = vadd.f32 %v341_v29, %v340_v22  ;;  %479 = vst [vmem:[%s660_s2 + $0x20] sm:$0xff] %v459_v30  }
  0xfd   :  { %v357_v35 = vadd.f32 %v356_v33, %v342_v31  ;;  %v521_v36 = vpop.f32.mrb[4].mxu0  ;;  %v321_v37 = vadd.f32 %v518_v20, %v320_v32  ;;  %v529_v38 = vpop.f32.mrb[4].mxu1 }
  0xfe   :  { %v192_v39 = vpop.f32.mrb[5].mxu0  ;;  %v224_v40 = vpop.f32.mrb[5].mxu1  ;;  %v346_v55 = vmul.f32 %v521_v36, %v521_v36  ;;  %v354_v15 = vmul.f32 %v529_v38, %v529_v38 }
  0xff   :  { %v322_v41 = vadd.f32 %v321_v37, %v192_v39  ;;  %v344_v42 = vmul.f32 %v192_v39, %v192_v39  ;;  %v358_v43 = vadd.f32 %v357_v35, %v343_v34  ;;  %v522_v44 = vpop.f32.mrb[6].mxu0  ;;  %v530_v45 = vpop.f32.mrb[6].mxu1  ;;  %v352_v9 = vmul.f32 %v224_v40, %v224_v40 }
 0x100   :  { %v454_v46 = vpack.c.bf16 %v522_v44, %v521_v36  ;;  %v195_v47 = vpop.f32.mrb[7].mxu0  ;;  %v474_v48 = vpack.c.bf16 %v530_v45, %v529_v38  ;;  %v227_v49 = vpop.f32.mrb[7].mxu1  ;;  %v347_v58 = vmul.f32 %v522_v44, %v522_v44 }
 0x101   :  { %v359_v50 = vadd.f32 %v358_v43, %v344_v42  ;;  %v449_v51 = vpack.c.bf16 %v195_v47, %v192_v39  ;;  %v323_v52 = vadd.f32 %v322_v41, %v195_v47  ;;  %v345_v53 = vmul.f32 %v195_v47, %v195_v47 }
 0x102   :  { %478 = vst [vmem:[%s660_s2 + $0x18] sm:$0xff] %v454_v46   ;;  %482 = vst [vmem:[%s660_s2 + $0x38] sm:$0xff] %v474_v48   ;;  %v469_v54 = vpack.c.bf16 %v227_v49, %v224_v40  ;;  %v353_v14 = vmul.f32 %v227_v49, %v227_v49 }
 0x103   :  { %477 = vst [vmem:[%s660_s2 + $0x10] sm:$0xff] %v449_v51   ;;  %v324_v56 = vadd.f32 %v521_v36, %v323_v52  ;;  %v360_v57 = vadd.f32 %v359_v50, %v345_v53 }
 0x104   :  { %481 = vst [vmem:[%s660_s2 + $0x30] sm:$0xff] %v469_v54  }
 0x105   :  { %v361_v59 = vadd.f32 %v360_v57, %v346_v55  ;;  %v325_v60 = vadd.f32 %v522_v44, %v324_v56 }
 0x107   :  { %v326_v62 = vadd.f32 %v325_v60, %v208_v19  ;;  %v362_v63 = vadd.f32 %v361_v59, %v347_v58  ;;  %v355_v19 = vmul.f32 %v530_v45, %v530_v45 }
 0x109   :  { %v363_v0 = vadd.f32 %v362_v63, %v348_v61  ;;  %v327_v1 = vadd.f32 %v326_v62, %v211_v26 }
 0x10b   :  { %v328_v4 = vadd.f32 %v525_v17, %v327_v1  ;;  %v364_v5 = vadd.f32 %v363_v0, %v349_v2 }
 0x10d   :  { %v365_v7 = vadd.f32 %v364_v5, %v350_v3  ;;  %v329_v8 = vadd.f32 %v526_v21, %v328_v4 }
 0x10f   :  { %v330_v10 = vadd.f32 %v329_v8, %v224_v40  ;;  %v366_v11 = vadd.f32 %v365_v7, %v351_v6 }
 0x111   :  { %v367_v12 = vadd.f32 %v366_v11, %v352_v9  ;;  %v331_v13 = vadd.f32 %v330_v10, %v227_v49 }
 0x113   :  { %v332_v16 = vadd.f32 %v529_v38, %v331_v13  ;;  %v368_v18 = vadd.f32 %v367_v12, %v353_v14 }
 0x115   :  { %v333_v20 = vadd.f32 %v530_v45, %v332_v16  ;;  %v369_v22 = vadd.f32 %v368_v18, %v354_v15 }
 0x117   :  { %v334_v23 = vrot.slane %v333_v20, 4  ;;  %v370_v24 = vadd.f32 %v369_v22, %v355_v19 }
 0x119   :  { %v335_v25 = vadd.f32 %v334_v23, %v333_v20  ;;  %v371_v17 = vrot.slane %v370_v24, 4 }
 0x11b   :  { %v336_v26 = vrot.slane %v335_v25, 2  ;;  %v372_v27 = vadd.f32 %v371_v17, %v370_v24 }
 0x11d   :  { %v337_v28 = vadd.f32 %v336_v26, %v335_v25  ;;  %v373_v21 = vrot.slane %v372_v27, 2 }
 0x11f   :  { %v338_v29 = vrot.slane %v337_v28, 1  ;;  %v374_v30 = vadd.f32 %v373_v21, %v372_v27 }
 0x121   :  { %v375_v31 = vrot.slane %v374_v30, 1  ;;  %v339_v32 = vadd.f32 %v338_v29, %v337_v28 }
 0x123   :  { %v376_v33 = vadd.f32 %v375_v31, %v374_v30 }
 0x125   :  { %v378_v34 = vsel %vm377_vm0, %v339_v32, %v376_v33 }
 0x126   :  { %379 = vst [vmem:[%s661_s3] sm:$0x3] %v378_v34 }

// kernel: unet_scn_forward.4
= control target key start
LH: loop header
LB: loop body
LE: loop exit
PB: predicated region body
PF: predicated region fallthrough
CT: control target
= control target key end

     0   :  { %vm794_vm0 = vcmask 1040384   ;;  %s1395_s1 = inlined_call_operand.vmem [shape: bf16[512,128], index: 1, kind: input, shape index: {}]   ;;  %s1396_s0 = inlined_call_operand.vmem [shape: bf16[128,512], index: 0, kind: input, shape index: {}]   ;;  %s1397_s2 = inlined_call_operand.vmem [shape: bf16[128,128], index: 2, kind: output, shape index: {0}]   ;;  %s1398_s3 = inlined_call_operand.vmem [shape: f32[1,2,128], index: 3, kind: output, shape index: {1}]  }
   0x1   :  { %v1076_v0 = vld [vmem:[%s1395_s1 + $0x40] sm:$0xff]   ;;  %v1080_v4 = vld [vmem:[%s1395_s1 + $0x48] sm:$0xff]   ;;  %v1084_v8 = vld [vmem:[%s1395_s1 + $0x50] sm:$0xff]  }
   0x2   :  { %v1077_v1 = vld [vmem:[%s1395_s1 + $0xc0] sm:$0xff]   ;;  %948 = vmatprep.subr.bf16.mxu0 %v1076_v0  ;;  %v1081_v5 = vld [vmem:[%s1395_s1 + $0xc8] sm:$0xff]   ;;  %v1085_v9 = vld [vmem:[%s1395_s1 + $0xd0] sm:$0xff]  }
   0x3   :  { %v1078_v2 = vld [vmem:[%s1395_s1] sm:$0xff]   ;;  %1012 = vmatprep.subr.bf16.mxu1 %v1077_v1  ;;  %v1082_v6 = vld [vmem:[%s1395_s1 + $0x8] sm:$0xff]   ;;  %v1086_v10 = vld [vmem:[%s1395_s1 + $0x10] sm:$0xff]  }
   0x4   :  { %v1079_v3 = vld [vmem:[%s1395_s1 + $0x80] sm:$0xff]   ;;  %949 = vmatpush3.bf16.msra.mxu0 %v1078_v2  ;;  %v1083_v7 = vld [vmem:[%s1395_s1 + $0x88] sm:$0xff]   ;;  %v1087_v11 = vld [vmem:[%s1395_s1 + $0x90] sm:$0xff]  }
   0x5   :  { %1013 = vmatpush3.bf16.msra.mxu1 %v1079_v3  ;;  %950 = vmatprep.subr.bf16.mxu0 %v1080_v4  ;;  %v1088_v12 = vld [vmem:[%s1395_s1 + $0x58] sm:$0xff]   ;;  %v1092_v16 = vld [vmem:[%s1395_s1 + $0x60] sm:$0xff]   ;;  %v1096_v20 = vld [vmem:[%s1395_s1 + $0x68] sm:$0xff]  }
   0x6   :  { %1014 = vmatprep.subr.bf16.mxu1 %v1081_v5  ;;  %v1089_v13 = vld [vmem:[%s1395_s1 + $0xd8] sm:$0xff]   ;;  %v1093_v17 = vld [vmem:[%s1395_s1 + $0xe0] sm:$0xff]   ;;  %v1097_v21 = vld [vmem:[%s1395_s1 + $0xe8] sm:$0xff]  }
   0x7   :  { %v1090_v14 = vld [vmem:[%s1395_s1 + $0x18] sm:$0xff]   ;;  %v1094_v18 = vld [vmem:[%s1395_s1 + $0x20] sm:$0xff]   ;;  %v1098_v22 = vld [vmem:[%s1395_s1 + $0x28] sm:$0xff]  }
   0x8   :  { %951 = vmatpush3.bf16.msra.mxu0 %v1082_v6  ;;  %v1091_v15 = vld [vmem:[%s1395_s1 + $0x98] sm:$0xff]   ;;  %v1095_v19 = vld [vmem:[%s1395_s1 + $0xa0] sm:$0xff]   ;;  %v1099_v23 = vld [vmem:[%s1395_s1 + $0xa8] sm:$0xff]  }
   0x9   :  { %1015 = vmatpush3.bf16.msra.mxu1 %v1083_v7  ;;  %952 = vmatprep.subr.bf16.mxu0 %v1084_v8  ;;  %v1100_v24 = vld [vmem:[%s1395_s1 + $0x70] sm:$0xff]   ;;  %v1104_v28 = vld [vmem:[%s1395_s1 + $0x78] sm:$0xff]  }
   0xa   :  { %1016 = vmatprep.subr.bf16.mxu1 %v1085_v9  ;;  %v1101_v25 = vld [vmem:[%s1395_s1 + $0xf0] sm:$0xff]   ;;  %v1105_v29 = vld [vmem:[%s1395_s1 + $0xf8] sm:$0xff]  }
   0xb   :  { %v1102_v26 = vld [vmem:[%s1395_s1 + $0x30] sm:$0xff]   ;;  %v1106_v30 = vld [vmem:[%s1395_s1 + $0x38] sm:$0xff]  }
   0xc   :  { %953 = vmatpush3.bf16.msra.mxu0 %v1086_v10  ;;  %v1103_v27 = vld [vmem:[%s1395_s1 + $0xb0] sm:$0xff]   ;;  %v1107_v31 = vld [vmem:[%s1395_s1 + $0xb8] sm:$0xff]  }
   0xd   :  { %1017 = vmatpush3.bf16.msra.mxu1 %v1087_v11  ;;  %954 = vmatprep.subr.bf16.mxu0 %v1088_v12  ;;  %v1108_v32 = vld [vmem:[%s1396_s0] ss:$16 sps:$4 sm:$0xff]   ;;  %v1110_v33 = vld [vmem:[%s1396_s0 + $0x4] ss:$16 sps:$4 sm:$0xff]   ;;  %v1111_v34 = vld [vmem:[%s1396_s0 + $0x8] ss:$16 sps:$4 sm:$0xff]  }
   0xe   :  { %1018 = vmatprep.subr.bf16.mxu1 %v1089_v13  ;;  %v1113_v35 = vld [vmem:[%s1396_s0 + $0xc] ss:$16 sps:$4 sm:$0xff]   ;;  %494 = vmatprep.mubr.bf16.mxu0 %v1110_v33  ;;  %v1114_v36 = vld [vmem:[%s1396_s0 + $0x24] ss:$16 sps:$4 sm:$0xff]   ;;  %v1118_v38 = vld [vmem:[%s1396_s0 + $0x20] ss:$16 sps:$4 sm:$0xff]  }
   0xf   :  { %591 = vmatprep.mubr.bf16.mxu1 %v1113_v35  ;;  %v1116_v37 = vld [vmem:[%s1396_s0 + $0x2c] ss:$16 sps:$4 sm:$0xff]   ;;  %v1119_v39 = vld [vmem:[%s1396_s0 + $0x28] ss:$16 sps:$4 sm:$0xff]   ;;  %v1120_v40 = vld [vmem:[%s1396_s0 + $0x44] ss:$16 sps:$4 sm:$0xff]  }
  0x10   :  { %955 = vmatpush3.bf16.msra.mxu0 %v1090_v14  ;;  %v1122_v41 = vld [vmem:[%s1396_s0 + $0x4c] ss:$16 sps:$4 sm:$0xff]   ;;  %v1124_v42 = vld [vmem:[%s1396_s0 + $0x40] ss:$16 sps:$4 sm:$0xff]   ;;  %v1125_v43 = vld [vmem:[%s1396_s0 + $0x48] ss:$16 sps:$4 sm:$0xff]  }
  0x11   :  { %1019 = vmatpush3.bf16.msra.mxu1 %v1091_v15  ;;  %956 = vmatprep.subr.bf16.mxu0 %v1092_v16  ;;  %v1126_v44 = vld [vmem:[%s1396_s0 + $0x64] ss:$16 sps:$4 sm:$0xff]   ;;  %v1128_v45 = vld [vmem:[%s1396_s0 + $0x6c] ss:$16 sps:$4 sm:$0xff]   ;;  %v1130_v46 = vld [vmem:[%s1396_s0 + $0x60] ss:$16 sps:$4 sm:$0xff]  }
  0x12   :  { %1020 = vmatprep.subr.bf16.mxu1 %v1093_v17  ;;  %v1131_v47 = vld [vmem:[%s1396_s0 + $0x68] ss:$16 sps:$4 sm:$0xff]   ;;  %v1132_v48 = vld [vmem:[%s1396_s0 + $0x84] ss:$16 sps:$4 sm:$0xff]   ;;  %v1134_v49 = vld [vmem:[%s1396_s0 + $0x8c] ss:$16 sps:$4 sm:$0xff]  }
  0x13   :  { %v1136_v50 = vld [vmem:[%s1396_s0 + $0x80] ss:$16 sps:$4 sm:$0xff]   ;;  %v1137_v51 = vld [vmem:[%s1396_s0 + $0x88] ss:$16 sps:$4 sm:$0xff]   ;;  %v1138_v52 = vld [vmem:[%s1396_s0 + $0xa4] ss:$16 sps:$4 sm:$0xff]  }
  0x14   :  { %957 = vmatpush3.bf16.msra.mxu0 %v1094_v18  ;;  %v1140_v53 = vld [vmem:[%s1396_s0 + $0xac] ss:$16 sps:$4 sm:$0xff]   ;;  %v1142_v54 = vld [vmem:[%s1396_s0 + $0xa0] ss:$16 sps:$4 sm:$0xff]   ;;  %v1143_v55 = vld [vmem:[%s1396_s0 + $0xa8] ss:$16 sps:$4 sm:$0xff]  }
  0x15   :  { %1021 = vmatpush3.bf16.msra.mxu1 %v1095_v19  ;;  %958 = vmatprep.subr.bf16.mxu0 %v1096_v20  ;;  %v1144_v56 = vld [vmem:[%s1396_s0 + $0xc4] ss:$16 sps:$4 sm:$0xff]   ;;  %v1146_v57 = vld [vmem:[%s1396_s0 + $0xcc] ss:$16 sps:$4 sm:$0xff]   ;;  %v1148_v58 = vld [vmem:[%s1396_s0 + $0xc0] ss:$16 sps:$4 sm:$0xff]  }
  0x16   :  { %1022 = vmatprep.subr.bf16.mxu1 %v1097_v21  ;;  %v1149_v59 = vld [vmem:[%s1396_s0 + $0xc8] ss:$16 sps:$4 sm:$0xff]   ;;  %v1150_v60 = vld [vmem:[%s1396_s0 + $0xe4] ss:$16 sps:$4 sm:$0xff]   ;;  %v1152_v61 = vld [vmem:[%s1396_s0 + $0xec] ss:$16 sps:$4 sm:$0xff]  }
  0x17   :  { %v1154_v62 = vld [vmem:[%s1396_s0 + $0xe0] ss:$16 sps:$4 sm:$0xff]   ;;  %v1155_v63 = vld [vmem:[%s1396_s0 + $0xe8] ss:$16 sps:$4 sm:$0xff]  }
  0x18   :  { %959 = vmatpush3.bf16.msra.mxu0 %v1098_v22 }
  0x19   :  { %1023 = vmatpush3.bf16.msra.mxu1 %v1099_v23  ;;  %960 = vmatprep.subr.bf16.mxu0 %v1100_v24 }
  0x1a   :  { %1024 = vmatprep.subr.bf16.mxu1 %v1101_v25 }
  0x1c   :  { %961 = vmatpush3.bf16.msra.mxu0 %v1102_v26 }
  0x1d   :  { %1025 = vmatpush3.bf16.msra.mxu1 %v1103_v27  ;;  %962 = vmatprep.subr.bf16.mxu0 %v1104_v28 }
  0x1e   :  { %1026 = vmatprep.subr.bf16.mxu1 %v1105_v29 }
  0x20   :  { %963 = vmatpush3.bf16.msra.mxu0 %v1106_v30 }
  0x21   :  { %1027 = vmatpush3.bf16.msra.mxu1 %v1107_v31 }
  0x23   :  { %495 = vmatmul.mubr.bf16.vlgmr.msra.gmra.mrb[0].mxu0 %v1108_v32 }
  0x24   :  { %592 = vmatmul.mubr.bf16.vlgmr.msra.gmra.mrb[0].mxu1 %v1111_v34  ;;  %502 = vmatprep.mubr.bf16.mxu0 %v1114_v36 }
  0x25   :  { %599 = vmatprep.mubr.bf16.mxu1 %v1116_v37 }
  0x2b   :  { %503 = vmatmul.mubr.bf16.gmra.mrb[4].mxu0 %v1118_v38 }
  0x2c   :  { %600 = vmatmul.mubr.bf16.gmra.mrb[4].mxu1 %v1119_v39  ;;  %510 = vmatprep.mubr.bf16.mxu0 %v1120_v40 }
  0x2d   :  { %607 = vmatprep.mubr.bf16.mxu1 %v1122_v41 }
  0x33   :  { %511 = vmatmul.mubr.bf16.gmra.mrb[8].mxu0 %v1124_v42 }
  0x34   :  { %608 = vmatmul.mubr.bf16.gmra.mrb[8].mxu1 %v1125_v43  ;;  %518 = vmatprep.mubr.bf16.mxu0 %v1126_v44 }
  0x35   :  { %615 = vmatprep.mubr.bf16.mxu1 %v1128_v45 }
  0x3b   :  { %519 = vmatmul.mubr.bf16.gmra.mrb[12].mxu0 %v1130_v46 }
  0x3c   :  { %616 = vmatmul.mubr.bf16.gmra.mrb[12].mxu1 %v1131_v47  ;;  %526 = vmatprep.mubr.bf16.mxu0 %v1132_v48 }
  0x3d   :  { %623 = vmatprep.mubr.bf16.mxu1 %v1134_v49 }
  0x43   :  { %527 = vmatmul.mubr.bf16.gmra.mrb[16].mxu0 %v1136_v50 }
  0x44   :  { %624 = vmatmul.mubr.bf16.gmra.mrb[16].mxu1 %v1137_v51  ;;  %534 = vmatprep.mubr.bf16.mxu0 %v1138_v52 }
  0x45   :  { %631 = vmatprep.mubr.bf16.mxu1 %v1140_v53 }
  0x4b   :  { %535 = vmatmul.mubr.bf16.gmra.mrb[20].mxu0 %v1142_v54 }
  0x4c   :  { %632 = vmatmul.mubr.bf16.gmra.mrb[20].mxu1 %v1143_v55  ;;  %542 = vmatprep.mubr.bf16.mxu0 %v1144_v56 }
  0x4d   :  { %639 = vmatprep.mubr.bf16.mxu1 %v1146_v57 }
  0x53   :  { %543 = vmatmul.mubr.bf16.gmra.mrb[24].mxu0 %v1148_v58 }
  0x54   :  { %640 = vmatmul.mubr.bf16.gmra.mrb[24].mxu1 %v1149_v59  ;;  %550 = vmatprep.mubr.bf16.mxu0 %v1150_v60 }
  0x55   :  { %647 = vmatprep.mubr.bf16.mxu1 %v1152_v61 }
  0x5b   :  { %551 = vmatmul.mubr.bf16.gmra.mrb[28].mxu0 %v1154_v62 }
  0x5c   :  { %648 = vmatmul.mubr.bf16.gmra.mrb[28].mxu1 %v1155_v63 }
  0xf6   :  { %v964_v0 = vpop.f32.mrb[0].mxu0 }
  0xf7   :  { %v1028_v1 = vpop.f32.mrb[0].mxu1  ;;  %v965_v2 = vpop.f32.mrb[1].mxu0 }
  0xf8   :  { %v966_v3 = vadd.f32 %v965_v2, %v964_v0  ;;  %v1029_v4 = vpop.f32.mrb[1].mxu1  ;;  %v967_v5 = vpop.f32.mrb[2].mxu0 }
  0xf9   :  { %v1030_v6 = vadd.f32 %v1029_v4, %v1028_v1  ;;  %v1031_v7 = vpop.f32.mrb[2].mxu1  ;;  %v968_v8 = vpop.f32.mrb[3].mxu0 }
  0xfa   :  { %v969_v9 = vadd.f32 %v968_v8, %v967_v5  ;;  %v1032_v10 = vpop.f32.mrb[3].mxu1 }
  0xfb   :  { %v594_v11 = vadd.f32 %v1030_v6, %v966_v3  ;;  %v1033_v12 = vadd.f32 %v1032_v10, %v1031_v7 }
  0xfd   :  { %v597_v13 = vadd.f32 %v1033_v12, %v969_v9  ;;  %v757_v15 = vmul.f32 %v594_v11, %v594_v11 }
  0xfe   :  { %v970_v14 = vpop.f32.mrb[4].mxu0 }
  0xff   :  { %v904_v16 = vpack.c.bf16 %v597_v13, %v594_v11  ;;  %v736_v17 = vadd.f32 %v597_v13, %v594_v11  ;;  %v758_v18 = vmul.f32 %v597_v13, %v597_v13  ;;  %v1034_v19 = vpop.f32.mrb[4].mxu1  ;;  %v971_v20 = vpop.f32.mrb[5].mxu0 }
 0x100   :  { %v972_v21 = vadd.f32 %v971_v20, %v970_v14  ;;  %v1035_v22 = vpop.f32.mrb[5].mxu1  ;;  %v973_v23 = vpop.f32.mrb[6].mxu0 }
 0x101   :  { %905 = vst [vmem:[%s1397_s2] sm:$0xff] %v904_v16   ;;  %v773_v24 = vadd.f32 %v758_v18, %v757_v15  ;;  %v1036_v25 = vadd.f32 %v1035_v22, %v1034_v19  ;;  %v1037_v26 = vpop.f32.mrb[6].mxu1  ;;  %v974_v27 = vpop.f32.mrb[7].mxu0 }
 0x102   :  { %v975_v28 = vadd.f32 %v974_v27, %v973_v23  ;;  %v1038_v29 = vpop.f32.mrb[7].mxu1 }
 0x103   :  { %v602_v30 = vadd.f32 %v1036_v25, %v972_v21  ;;  %v1039_v31 = vadd.f32 %v1038_v29, %v1037_v26 }
 0x105   :  { %v737_v32 = vadd.f32 %v736_v17, %v602_v30  ;;  %v759_v33 = vmul.f32 %v602_v30, %v602_v30  ;;  %v605_v34 = vadd.f32 %v1039_v31, %v975_v28 }
 0x106   :  { %v976_v35 = vpop.f32.mrb[8].mxu0 }
 0x107   :  { %v774_v36 = vadd.f32 %v773_v24, %v759_v33  ;;  %v909_v37 = vpack.c.bf16 %v605_v34, %v602_v30  ;;  %v738_v38 = vadd.f32 %v737_v32, %v605_v34  ;;  %v760_v39 = vmul.f32 %v605_v34, %v605_v34  ;;  %v1040_v40 = vpop.f32.mrb[8].mxu1  ;;  %v977_v41 = vpop.f32.mrb[9].mxu0 }
 0x108   :  { %v978_v42 = vadd.f32 %v977_v41, %v976_v35  ;;  %v1041_v43 = vpop.f32.mrb[9].mxu1  ;;  %v979_v44 = vpop.f32.mrb[10].mxu0 }
 0x109   :  { %941 = vst [vmem:[%s1397_s2 + $0x8] sm:$0xff] %v909_v37   ;;  %v775_v45 = vadd.f32 %v774_v36, %v760_v39  ;;  %v1042_v46 = vadd.f32 %v1041_v43, %v1040_v40  ;;  %v1043_v47 = vpop.f32.mrb[10].mxu1  ;;  %v980_v48 = vpop.f32.mrb[11].mxu0 }
 0x10a   :  { %v981_v49 = vadd.f32 %v980_v48, %v979_v44  ;;  %v1044_v50 = vpop.f32.mrb[11].mxu1 }
 0x10b   :  { %v610_v51 = vadd.f32 %v1042_v46, %v978_v42  ;;  %v1045_v52 = vadd.f32 %v1044_v50, %v1043_v47 }
 0x10d   :  { %v739_v53 = vadd.f32 %v738_v38, %v610_v51  ;;  %v761_v54 = vmul.f32 %v610_v51, %v610_v51  ;;  %v613_v55 = vadd.f32 %v1045_v52, %v981_v49 }
 0x10e   :  { %v982_v56 = vpop.f32.mrb[12].mxu0 }
 0x10f   :  { %v776_v57 = vadd.f32 %v775_v45, %v761_v54  ;;  %v914_v58 = vpack.c.bf16 %v613_v55, %v610_v51  ;;  %v740_v59 = vadd.f32 %v739_v53, %v613_v55  ;;  %v762_v60 = vmul.f32 %v613_v55, %v613_v55  ;;  %v1046_v61 = vpop.f32.mrb[12].mxu1  ;;  %v983_v62 = vpop.f32.mrb[13].mxu0 }
 0x110   :  { %v984_v63 = vadd.f32 %v983_v62, %v982_v56  ;;  %v1047_v0 = vpop.f32.mrb[13].mxu1  ;;  %v985_v1 = vpop.f32.mrb[14].mxu0 }
 0x111   :  { %942 = vst [vmem:[%s1397_s2 + $0x10] sm:$0xff] %v914_v58   ;;  %v777_v2 = vadd.f32 %v776_v57, %v762_v60  ;;  %v1048_v3 = vadd.f32 %v1047_v0, %v1046_v61  ;;  %v1049_v4 = vpop.f32.mrb[14].mxu1  ;;  %v986_v5 = vpop.f32.mrb[15].mxu0 }
 0x112   :  { %v987_v6 = vadd.f32 %v986_v5, %v985_v1  ;;  %v1050_v7 = vpop.f32.mrb[15].mxu1 }
 0x113   :  { %v618_v8 = vadd.f32 %v1048_v3, %v984_v63  ;;  %v1051_v9 = vadd.f32 %v1050_v7, %v1049_v4 }
 0x115   :  { %v741_v10 = vadd.f32 %v740_v59, %v618_v8  ;;  %v763_v11 = vmul.f32 %v618_v8, %v618_v8  ;;  %v621_v12 = vadd.f32 %v1051_v9, %v987_v6 }
 0x116   :  { %v988_v13 = vpop.f32.mrb[16].mxu0 }
 0x117   :  { %v778_v14 = vadd.f32 %v777_v2, %v763_v11  ;;  %v919_v15 = vpack.c.bf16 %v621_v12, %v618_v8  ;;  %v742_v16 = vadd.f32 %v741_v10, %v621_v12  ;;  %v764_v17 = vmul.f32 %v621_v12, %v621_v12  ;;  %v1052_v18 = vpop.f32.mrb[16].mxu1  ;;  %v989_v19 = vpop.f32.mrb[17].mxu0 }
 0x118   :  { %v990_v20 = vadd.f32 %v989_v19, %v988_v13  ;;  %v1053_v21 = vpop.f32.mrb[17].mxu1  ;;  %v991_v22 = vpop.f32.mrb[18].mxu0 }
 0x119   :  { %943 = vst [vmem:[%s1397_s2 + $0x18] sm:$0xff] %v919_v15   ;;  %v779_v23 = vadd.f32 %v778_v14, %v764_v17  ;;  %v1054_v24 = vadd.f32 %v1053_v21, %v1052_v18  ;;  %v1055_v25 = vpop.f32.mrb[18].mxu1  ;;  %v992_v26 = vpop.f32.mrb[19].mxu0 }
 0x11a   :  { %v993_v27 = vadd.f32 %v992_v26, %v991_v22  ;;  %v1056_v28 = vpop.f32.mrb[19].mxu1 }
 0x11b   :  { %v626_v29 = vadd.f32 %v1054_v24, %v990_v20  ;;  %v1057_v30 = vadd.f32 %v1056_v28, %v1055_v25 }
 0x11d   :  { %v743_v31 = vadd.f32 %v742_v16, %v626_v29  ;;  %v765_v32 = vmul.f32 %v626_v29, %v626_v29  ;;  %v629_v33 = vadd.f32 %v1057_v30, %v993_v27 }
 0x11e   :  { %v994_v34 = vpop.f32.mrb[20].mxu0 }
 0x11f   :  { %v780_v35 = vadd.f32 %v779_v23, %v765_v32  ;;  %v924_v36 = vpack.c.bf16 %v629_v33, %v626_v29  ;;  %v744_v37 = vadd.f32 %v743_v31, %v629_v33  ;;  %v766_v38 = vmul.f32 %v629_v33, %v629_v33  ;;  %v1058_v39 = vpop.f32.mrb[20].mxu1  ;;  %v995_v40 = vpop.f32.mrb[21].mxu0 }
 0x120   :  { %v996_v41 = vadd.f32 %v995_v40, %v994_v34  ;;  %v1059_v42 = vpop.f32.mrb[21].mxu1  ;;  %v997_v43 = vpop.f32.mrb[22].mxu0 }
 0x121   :  { %944 = vst [vmem:[%s1397_s2 + $0x20] sm:$0xff] %v924_v36   ;;  %v781_v44 = vadd.f32 %v780_v35, %v766_v38  ;;  %v1060_v45 = vadd.f32 %v1059_v42, %v1058_v39  ;;  %v1061_v46 = vpop.f32.mrb[22].mxu1  ;;  %v998_v47 = vpop.f32.mrb[23].mxu0 }
 0x122   :  { %v999_v48 = vadd.f32 %v998_v47, %v997_v43  ;;  %v1062_v49 = vpop.f32.mrb[23].mxu1 }
 0x123   :  { %v634_v50 = vadd.f32 %v1060_v45, %v996_v41  ;;  %v1063_v51 = vadd.f32 %v1062_v49, %v1061_v46 }
 0x125   :  { %v745_v52 = vadd.f32 %v744_v37, %v634_v50  ;;  %v767_v53 = vmul.f32 %v634_v50, %v634_v50  ;;  %v637_v54 = vadd.f32 %v1063_v51, %v999_v48 }
 0x126   :  { %v1000_v55 = vpop.f32.mrb[24].mxu0 }
 0x127   :  { %v782_v56 = vadd.f32 %v781_v44, %v767_v53  ;;  %v929_v57 = vpack.c.bf16 %v637_v54, %v634_v50  ;;  %v746_v58 = vadd.f32 %v745_v52, %v637_v54  ;;  %v768_v59 = vmul.f32 %v637_v54, %v637_v54  ;;  %v1064_v60 = vpop.f32.mrb[24].mxu1  ;;  %v1001_v61 = vpop.f32.mrb[25].mxu0 }
 0x128   :  { %v1002_v62 = vadd.f32 %v1001_v61, %v1000_v55  ;;  %v1065_v63 = vpop.f32.mrb[25].mxu1  ;;  %v1003_v0 = vpop.f32.mrb[26].mxu0 }
 0x129   :  { %945 = vst [vmem:[%s1397_s2 + $0x28] sm:$0xff] %v929_v57   ;;  %v783_v1 = vadd.f32 %v782_v56, %v768_v59  ;;  %v1066_v2 = vadd.f32 %v1065_v63, %v1064_v60  ;;  %v1067_v3 = vpop.f32.mrb[26].mxu1  ;;  %v1004_v4 = vpop.f32.mrb[27].mxu0 }
 0x12a   :  { %v1005_v5 = vadd.f32 %v1004_v4, %v1003_v0  ;;  %v1068_v6 = vpop.f32.mrb[27].mxu1 }
 0x12b   :  { %v642_v7 = vadd.f32 %v1066_v2, %v1002_v62  ;;  %v1069_v8 = vadd.f32 %v1068_v6, %v1067_v3 }
 0x12d   :  { %v747_v9 = vadd.f32 %v746_v58, %v642_v7  ;;  %v769_v10 = vmul.f32 %v642_v7, %v642_v7  ;;  %v645_v11 = vadd.f32 %v1069_v8, %v1005_v5 }
 0x12e   :  { %v1006_v12 = vpop.f32.mrb[28].mxu0 }
 0x12f   :  { %v784_v13 = vadd.f32 %v783_v1, %v769_v10  ;;  %v934_v14 = vpack.c.bf16 %v645_v11, %v642_v7  ;;  %v748_v15 = vadd.f32 %v747_v9, %v645_v11  ;;  %v770_v16 = vmul.f32 %v645_v11, %v645_v11  ;;  %v1070_v17 = vpop.f32.mrb[28].mxu1  ;;  %v1007_v18 = vpop.f32.mrb[29].mxu0 }
 0x130   :  { %v1008_v19 = vadd.f32 %v1007_v18, %v1006_v12  ;;  %v1071_v20 = vpop.f32.mrb[29].mxu1  ;;  %v1009_v21 = vpop.f32.mrb[30].mxu0 }
 0x131   :  { %946 = vst [vmem:[%s1397_s2 + $0x30] sm:$0xff] %v934_v14   ;;  %v785_v22 = vadd.f32 %v784_v13, %v770_v16  ;;  %v1072_v23 = vadd.f32 %v1071_v20, %v1070_v17  ;;  %v1073_v24 = vpop.f32.mrb[30].mxu1  ;;  %v1010_v25 = vpop.f32.mrb[31].mxu0 }
 0x132   :  { %v1011_v26 = vadd.f32 %v1010_v25, %v1009_v21  ;;  %v1074_v27 = vpop.f32.mrb[31].mxu1 }
 0x133   :  { %v650_v28 = vadd.f32 %v1072_v23, %v1008_v19  ;;  %v1075_v29 = vadd.f32 %v1074_v27, %v1073_v24 }
 0x135   :  { %v749_v30 = vadd.f32 %v748_v15, %v650_v28  ;;  %v771_v31 = vmul.f32 %v650_v28, %v650_v28  ;;  %v653_v32 = vadd.f32 %v1075_v29, %v1011_v26 }
 0x137   :  { %v786_v33 = vadd.f32 %v785_v22, %v771_v31  ;;  %v939_v34 = vpack.c.bf16 %v653_v32, %v650_v28  ;;  %v750_v35 = vadd.f32 %v749_v30, %v653_v32  ;;  %v772_v36 = vmul.f32 %v653_v32, %v653_v32 }
 0x139   :  { %947 = vst [vmem:[%s1397_s2 + $0x38] sm:$0xff] %v939_v34   ;;  %v751_v37 = vrot.slane %v750_v35, 4  ;;  %v787_v38 = vadd.f32 %v786_v33, %v772_v36 }
 0x13b   :  { %v752_v39 = vadd.f32 %v751_v37, %v750_v35  ;;  %v788_v40 = vrot.slane %v787_v38, 4 }
 0x13d   :  { %v753_v41 = vrot.slane %v752_v39, 2  ;;  %v789_v42 = vadd.f32 %v788_v40, %v787_v38 }
 0x13f   :  { %v754_v43 = vadd.f32 %v753_v41, %v752_v39  ;;  %v790_v44 = vrot.slane %v789_v42, 2 }
 0x141   :  { %v755_v45 = vrot.slane %v754_v43, 1  ;;  %v791_v46 = vadd.f32 %v790_v44, %v789_v42 }
 0x143   :  { %v792_v47 = vrot.slane %v791_v46, 1  ;;  %v756_v48 = vadd.f32 %v755_v45, %v754_v43 }
 0x145   :  { %v793_v49 = vadd.f32 %v792_v47, %v791_v46 }
 0x147   :  { %v795_v50 = vsel %vm794_vm0, %v756_v48, %v793_v49 }
 0x148   :  { %796 = vst [vmem:[%s1398_s3] sm:$0x3] %v795_v50 }

// kernel: unet_scn_forward.5
= control target key start
LH: loop header
LB: loop body
LE: loop exit
PB: predicated region body
PF: predicated region fallthrough
CT: control target
= control target key end

     0   :  { %s604_s3 = inlined_call_operand.vmem [shape: bf16[128,128], index: 3, kind: input, shape index: {}]   ;;  %s605_s0 = inlined_call_operand.vmem [shape: bf16[128,128], index: 0, kind: input, shape index: {}]   ;;  %s606_s1 = inlined_call_operand.vmem [shape: f32[1,128], index: 1, kind: input, shape index: {}]   ;;  %s607_s2 = inlined_call_operand.vmem [shape: f32[1,128], index: 2, kind: input, shape index: {}]   ;;  %s608_s4 = inlined_call_operand.vmem [shape: f32[1,128], index: 4, kind: input, shape index: {}]   ;;  %s609_s5 = inlined_call_operand.vmem [shape: f32[128,128], index: 5, kind: output, shape index: {}]  }
   0x1   :  { %v425_v0 = vld [vmem:[%s604_s3] sm:$0xff]   ;;  %v426_v1 = vld [vmem:[%s604_s3 + $0x8] sm:$0xff]   ;;  %v427_v2 = vld [vmem:[%s604_s3 + $0x10] sm:$0xff]  }
   0x2   :  { %377 = vmatprep.subr.bf16.mxu0 %v425_v0  ;;  %409 = vmatprep.subr.bf16.mxu1 %v425_v0  ;;  %v428_v3 = vld [vmem:[%s604_s3 + $0x18] sm:$0xff]   ;;  %v323_v4 = vld [vmem:[%s605_s0] sm:$0xff]   ;;  %v354_v9 = vld [vmem:[%s605_s0 + $0x8] sm:$0xff]  }
   0x3   :  { %378 = vmatpush3.bf16.msra.mxu0 %v425_v0  ;;  %417 = vmatpush3.bf16.msra.mxu1 %v425_v0  ;;  %v481_v5 = vld [vmem:[%s606_s1] ss:$0 sm:$0xff]  ;;  %v324_v6 = vunpack.c.l.bf16 %v323_v4  ;;  %v325_v7 = vunpack.c.h.bf16 %v323_v4  ;;  %v358_v13 = vld [vmem:[%s605_s0 + $0x28] sm:$0xff]   ;;  %v355_v16 = vld [vmem:[%s605_s0 + $0x10] sm:$0xff]   ;;  %v328_v20 = vunpack.c.l.bf16 %v354_v9  ;;  %v329_v21 = vunpack.c.h.bf16 %v354_v9 }
   0x4   :  { %379 = vmatprep.subr.bf16.mxu0 %v426_v1  ;;  %410 = vmatprep.subr.bf16.mxu1 %v426_v1  ;;  %v357_v8 = vld [vmem:[%s605_s0 + $0x20] sm:$0xff]   ;;  %v344_v24 = vunpack.c.l.bf16 %v358_v13  ;;  %v345_v25 = vunpack.c.h.bf16 %v358_v13  ;;  %v332_v28 = vunpack.c.l.bf16 %v355_v16  ;;  %v359_v31 = vld [vmem:[%s605_s0 + $0x30] sm:$0xff]   ;;  %v430_v32 = vld [vmem:[%s604_s3 + $0x28] sm:$0xff]   ;;  %v333_v40 = vunpack.c.h.bf16 %v355_v16 }
   0x5   :  { %v492_v10 = vld [vmem:[%s607_s2] ss:$0 sm:$0xff]  ;;  %v340_v11 = vunpack.c.l.bf16 %v357_v8  ;;  %v341_v12 = vunpack.c.h.bf16 %v357_v8  ;;  %v60_v14 = vmul.f32 %v324_v6, %v481_v5  ;;  %v61_v15 = vmul.f32 %v325_v7, %v481_v5  ;;  %v356_v44 = vld [vmem:[%s605_s0 + $0x18] sm:$0xff]   ;;  %v431_v48 = vld [vmem:[%s604_s3 + $0x30] sm:$0xff]  }
   0x6   :  { %v429_v17 = vld [vmem:[%s604_s3 + $0x20] sm:$0xff]   ;;  %v62_v35 = vmul.f32 %v328_v20, %v481_v5  ;;  %v63_v36 = vmul.f32 %v329_v21, %v481_v5  ;;  %v70_v38 = vmul.f32 %v344_v24, %v481_v5  ;;  %v71_v39 = vmul.f32 %v345_v25, %v481_v5  ;;  %v360_v47 = vld [vmem:[%s605_s0 + $0x38] sm:$0xff]  }
   0x7   :  { %380 = vmatpush3.bf16.msra.mxu0 %v426_v1  ;;  %418 = vmatpush3.bf16.msra.mxu1 %v426_v1  ;;  %v68_v18 = vmul.f32 %v340_v11, %v481_v5  ;;  %v69_v19 = vmul.f32 %v341_v12, %v481_v5  ;;  %v83_v22 = vadd.f32 %v492_v10, %v60_v14  ;;  %v348_v43 = vunpack.c.l.bf16 %v359_v31  ;;  %v432_v63 = vld [vmem:[%s604_s3 + $0x38] sm:$0xff]  }
   0x8   :  { %381 = vmatprep.subr.bf16.mxu0 %v427_v2  ;;  %411 = vmatprep.subr.bf16.mxu1 %v427_v2  ;;  %v84_v23 = vadd.f32 %v492_v10, %v61_v15  ;;  %v64_v42 = vmul.f32 %v332_v28, %v481_v5  ;;  %v65_v45 = vmul.f32 %v333_v40, %v481_v5  ;;  %v349_v46 = vunpack.c.h.bf16 %v359_v31 }
   0x9   :  { %v91_v26 = vadd.f32 %v492_v10, %v68_v18  ;;  %v92_v27 = vadd.f32 %v492_v10, %v69_v19  ;;  %v99_v29 = vmax.f32 %v83_v22, 0.0  ;;  %v85_v49 = vadd.f32 %v492_v10, %v62_v35 }
   0xa   :  { %v100_v30 = vmax.f32 %v84_v23, 0.0  ;;  %v86_v50 = vadd.f32 %v492_v10, %v63_v36  ;;  %v72_v51 = vmul.f32 %v348_v43, %v481_v5  ;;  %v93_v52 = vadd.f32 %v492_v10, %v70_v38 }
   0xb   :  { %382 = vmatpush3.bf16.msra.mxu0 %v427_v2  ;;  %419 = vmatpush3.bf16.msra.mxu1 %v427_v2  ;;  %v107_v33 = vmax.f32 %v91_v26, 0.0  ;;  %v108_v34 = vmax.f32 %v92_v27, 0.0  ;;  %v94_v53 = vadd.f32 %v492_v10, %v71_v39  ;;  %v73_v54 = vmul.f32 %v349_v46, %v481_v5 }
   0xc   :  { %383 = vmatprep.subr.bf16.mxu0 %v428_v3  ;;  %412 = vmatprep.subr.bf16.mxu1 %v428_v3  ;;  %v115_v37 = vpack.c.bf16 %v100_v30, %v99_v29  ;;  %v336_v55 = vunpack.c.l.bf16 %v356_v44  ;;  %v87_v56 = vadd.f32 %v492_v10, %v64_v42  ;;  %v337_v57 = vunpack.c.h.bf16 %v356_v44 }
   0xd   :  { %v119_v41 = vpack.c.bf16 %v108_v34, %v107_v33  ;;  %v352_v58 = vunpack.c.l.bf16 %v360_v47  ;;  %v353_v59 = vunpack.c.h.bf16 %v360_v47  ;;  %v88_v60 = vadd.f32 %v492_v10, %v65_v45 }
   0xe   :  { %393 = vmatprep.mubr.bf16.mxu0 %v115_v37  ;;  %v95_v61 = vadd.f32 %v492_v10, %v72_v51  ;;  %v96_v62 = vadd.f32 %v492_v10, %v73_v54  ;;  %v101_v0 = vmax.f32 %v85_v49, 0.0  ;;  %v102_v1 = vmax.f32 %v86_v50, 0.0 }
   0xf   :  { %384 = vmatpush3.bf16.msra.mxu0 %v428_v3  ;;  %420 = vmatpush3.bf16.msra.mxu1 %v428_v3  ;;  %v109_v2 = vmax.f32 %v93_v52, 0.0  ;;  %v110_v3 = vmax.f32 %v94_v53, 0.0  ;;  %v66_v4 = vmul.f32 %v336_v55, %v481_v5  ;;  %v67_v6 = vmul.f32 %v337_v57, %v481_v5 }
  0x10   :  { %385 = vmatprep.subr.bf16.mxu0 %v429_v17  ;;  %413 = vmatprep.subr.bf16.mxu1 %v429_v17  ;;  %v74_v7 = vmul.f32 %v352_v58, %v481_v5  ;;  %v75_v8 = vmul.f32 %v353_v59, %v481_v5  ;;  %v103_v9 = vmax.f32 %v87_v56, 0.0  ;;  %v104_v11 = vmax.f32 %v88_v60, 0.0 }
  0x11   :  { %401 = vmatprep.mubr.bf16.mxu1 %v119_v41  ;;  %v111_v12 = vmax.f32 %v95_v61, 0.0  ;;  %v112_v13 = vmax.f32 %v96_v62, 0.0  ;;  %v116_v14 = vpack.c.bf16 %v102_v1, %v101_v0  ;;  %v120_v15 = vpack.c.bf16 %v110_v3, %v109_v2 }
  0x12   :  { %v89_v16 = vadd.f32 %v492_v10, %v66_v4  ;;  %v97_v18 = vadd.f32 %v492_v10, %v74_v7  ;;  %v98_v19 = vadd.f32 %v492_v10, %v75_v8  ;;  %v117_v5 = vpack.c.bf16 %v104_v11, %v103_v9 }
  0x13   :  { %386 = vmatpush3.bf16.msra.mxu0 %v429_v17  ;;  %421 = vmatpush3.bf16.msra.mxu1 %v429_v17  ;;  %v90_v17 = vadd.f32 %v492_v10, %v67_v6  ;;  %v121_v20 = vpack.c.bf16 %v112_v13, %v111_v12  ;;  %v313_v10 = vld [vmem:[%s608_s4] ss:$0 sm:$0xff] }
  0x14   :  { %387 = vmatprep.subr.bf16.mxu0 %v430_v32  ;;  %414 = vmatprep.subr.bf16.mxu1 %v430_v32  ;;  %v105_v21 = vmax.f32 %v89_v16, 0.0  ;;  %v113_v23 = vmax.f32 %v97_v18, 0.0  ;;  %v114_v24 = vmax.f32 %v98_v19, 0.0 }
  0x15   :  { %v106_v22 = vmax.f32 %v90_v17, 0.0 }
  0x16   :  { %v122_v26 = vpack.c.bf16 %v114_v24, %v113_v23 }
  0x17   :  { %388 = vmatpush3.bf16.msra.mxu0 %v430_v32  ;;  %422 = vmatpush3.bf16.msra.mxu1 %v430_v32  ;;  %v118_v25 = vpack.c.bf16 %v106_v22, %v105_v21 }
  0x18   :  { %389 = vmatprep.subr.bf16.mxu0 %v431_v48  ;;  %415 = vmatprep.subr.bf16.mxu1 %v431_v48 }
  0x1b   :  { %390 = vmatpush3.bf16.msra.mxu0 %v431_v48  ;;  %423 = vmatpush3.bf16.msra.mxu1 %v431_v48 }
  0x1c   :  { %391 = vmatprep.subr.bf16.mxu0 %v432_v63  ;;  %416 = vmatprep.subr.bf16.mxu1 %v432_v63 }
  0x1f   :  { %392 = vmatpush3.bf16.msra.mxu0 %v432_v63  ;;  %424 = vmatpush3.bf16.msra.mxu1 %v432_v63 }
  0x22   :  { %394 = vmatmul.mubr.bf16.vlgmr.msra.gmra.mrb[0].mxu0 %v116_v14  ;;  %402 = vmatmul.mubr.bf16.vlgmr.msra.gmra.mrb[0].mxu1 %v120_v15 }
  0x23   :  { %397 = vmatprep.mubr.bf16.mxu0 %v117_v5  ;;  %405 = vmatprep.mubr.bf16.mxu1 %v121_v20 }
  0x2a   :  { %398 = vmatmul.mubr.bf16.gmra.mrb[4].mxu0 %v118_v25  ;;  %406 = vmatmul.mubr.bf16.gmra.mrb[4].mxu1 %v122_v26 }
  0xf5   :  { %v395_v27 = vpop.f32.mrb[0].mxu0  ;;  %v403_v28 = vpop.f32.mrb[0].mxu1 }
  0xf6   :  { %v237_v29 = vadd.f32 %v395_v27, %v313_v10  ;;  %v269_v30 = vadd.f32 %v403_v28, %v313_v10  ;;  %v228_v31 = vpop.f32.mrb[1].mxu0  ;;  %v260_v32 = vpop.f32.mrb[1].mxu1 }
  0xf7   :  { %v229_v33 = vadd.f32 %v313_v10, %v228_v31  ;;  %v261_v34 = vadd.f32 %v313_v10, %v260_v32  ;;  %v396_v35 = vpop.f32.mrb[2].mxu0  ;;  %v404_v36 = vpop.f32.mrb[2].mxu1 }
  0xf8   :  { %293 = vst [vmem:[%s609_s5 + $0x10] sm:$0xff] %v237_v29  ;;  %301 = vst [vmem:[%s609_s5 + $0x50] sm:$0xff] %v269_v30  ;;  %v240_v37 = vadd.f32 %v396_v35, %v313_v10  ;;  %v272_v38 = vadd.f32 %v404_v36, %v313_v10  ;;  %v231_v39 = vpop.f32.mrb[3].mxu0  ;;  %v263_v40 = vpop.f32.mrb[3].mxu1 }
  0xf9   :  { %291 = vst [vmem:[%s609_s5] sm:$0xff] %v229_v33  ;;  %299 = vst [vmem:[%s609_s5 + $0x40] sm:$0xff] %v261_v34  ;;  %v232_v41 = vadd.f32 %v313_v10, %v231_v39  ;;  %v264_v42 = vadd.f32 %v313_v10, %v263_v40 }
  0xfa   :  { %294 = vst [vmem:[%s609_s5 + $0x18] sm:$0xff] %v240_v37  ;;  %302 = vst [vmem:[%s609_s5 + $0x58] sm:$0xff] %v272_v38 }
  0xfb   :  { %292 = vst [vmem:[%s609_s5 + $0x8] sm:$0xff] %v232_v41  ;;  %300 = vst [vmem:[%s609_s5 + $0x48] sm:$0xff] %v264_v42 }
  0xfd   :  { %v399_v43 = vpop.f32.mrb[4].mxu0  ;;  %v407_v44 = vpop.f32.mrb[4].mxu1 }
  0xfe   :  { %v253_v45 = vadd.f32 %v399_v43, %v313_v10  ;;  %v285_v46 = vadd.f32 %v407_v44, %v313_v10  ;;  %v244_v47 = vpop.f32.mrb[5].mxu0  ;;  %v276_v48 = vpop.f32.mrb[5].mxu1 }
  0xff   :  { %v245_v49 = vadd.f32 %v313_v10, %v244_v47  ;;  %v277_v50 = vadd.f32 %v313_v10, %v276_v48  ;;  %v400_v51 = vpop.f32.mrb[6].mxu0  ;;  %v408_v52 = vpop.f32.mrb[6].mxu1 }
 0x100   :  { %297 = vst [vmem:[%s609_s5 + $0x30] sm:$0xff] %v253_v45  ;;  %305 = vst [vmem:[%s609_s5 + $0x70] sm:$0xff] %v285_v46  ;;  %v256_v53 = vadd.f32 %v400_v51, %v313_v10  ;;  %v288_v54 = vadd.f32 %v408_v52, %v313_v10  ;;  %v247_v55 = vpop.f32.mrb[7].mxu0  ;;  %v279_v56 = vpop.f32.mrb[7].mxu1 }
 0x101   :  { %295 = vst [vmem:[%s609_s5 + $0x20] sm:$0xff] %v245_v49  ;;  %303 = vst [vmem:[%s609_s5 + $0x60] sm:$0xff] %v277_v50  ;;  %v248_v57 = vadd.f32 %v313_v10, %v247_v55  ;;  %v280_v58 = vadd.f32 %v313_v10, %v279_v56 }
 0x102   :  { %298 = vst [vmem:[%s609_s5 + $0x38] sm:$0xff] %v256_v53  ;;  %306 = vst [vmem:[%s609_s5 + $0x78] sm:$0xff] %v288_v54 }
 0x103   :  { %296 = vst [vmem:[%s609_s5 + $0x28] sm:$0xff] %v248_v57  ;;  %304 = vst [vmem:[%s609_s5 + $0x68] sm:$0xff] %v280_v58 }

</bundles_post_ra>
